<compile_context>
chip_gen: v7x
topology: tpu7x:2x2x1
jax: 0.10.0
libtpu: 0.0.40
codegen_flags: <defaults>
</compile_context>

<pallas_src>
import jax
import jax.numpy as jnp
from jax.experimental import pallas as pl
from jax.experimental.pallas import tpu as pltpu


def _round_up(n, m):
    return ((n + m - 1) // m) * m


def mlp_kernel(x_ref, w0_ref, b0_ref, w1_ref, b1_ref, w2_ref, b2_ref, o_ref):
    """Fused 3-layer MLP: (Linear+ReLU) x 2 -> Linear, one batch tile per step.

    bf16 MXU operands, f32 accumulation; bias add / ReLU stay f32 on the VPU.
    """
    x = x_ref[...]                                                     # bf16
    h = jnp.dot(x, w0_ref[...], preferred_element_type=jnp.float32) + b0_ref[...]
    h = jnp.maximum(h, 0.0).astype(jnp.bfloat16)
    h = jnp.dot(h, w1_ref[...], preferred_element_type=jnp.float32) + b1_ref[...]
    h = jnp.maximum(h, 0.0).astype(jnp.bfloat16)
    out = jnp.dot(h, w2_ref[...], preferred_element_type=jnp.float32) + b2_ref[...]
    o_ref[...] = out                                                   # f32, lane-dense


def net_forward(x, params, *, tile_b=256):
    """Pallas wrapper: pads all dims to TPU-friendly sizes, tiles the batch.

    Weights/biases are small and kept VMEM-resident across grid steps.
    """
    (w0, b0), (w1, b1), (w2, b2) = params
    B, n_in = x.shape
    nh0, nh1, n_out = w0.shape[1], w1.shape[1], w2.shape[1]
    out_dtype = x.dtype

    # Pad every feature dim to a multiple of 128 (lane-dense, no masked stores)
    n_in_p = _round_up(n_in, 128)
    nh0_p = _round_up(nh0, 128)
    nh1_p = _round_up(nh1, 128)
    n_out_p = _round_up(n_out, 128)

    # Batch tile: large for throughput, clamped (and 8-aligned) for small B.
    tile = min(tile_b, _round_up(B, 8))
    B_p = _round_up(B, tile)

    x_p = jnp.pad(x.astype(jnp.float32),
                  ((0, B_p - B), (0, n_in_p - n_in))).astype(jnp.bfloat16)
    w0_p = jnp.pad(w0, ((0, n_in_p - n_in), (0, nh0_p - nh0))).astype(jnp.bfloat16)
    b0_p = jnp.pad(b0, ((0, 0), (0, nh0_p - nh0)))                     # f32
    w1_p = jnp.pad(w1, ((0, nh0_p - nh0), (0, nh1_p - nh1))).astype(jnp.bfloat16)
    b1_p = jnp.pad(b1, ((0, 0), (0, nh1_p - nh1)))                     # f32
    w2_p = jnp.pad(w2, ((0, nh1_p - nh1), (0, n_out_p - n_out))).astype(jnp.bfloat16)
    b2_p = jnp.pad(b2, ((0, 0), (0, n_out_p - n_out)))                 # f32

    def resident(arr):
        # whole-array block, same block index every step -> stays VMEM-resident
        return pl.BlockSpec(arr.shape, lambda i: (0, 0))

    out = pl.pallas_call(
        mlp_kernel,
        out_shape=jax.ShapeDtypeStruct((B_p, n_out_p), jnp.float32),
        grid_spec=pltpu.PrefetchScalarGridSpec(
            num_scalar_prefetch=0,
            grid=(B_p // tile,),
            in_specs=[
                pl.BlockSpec((tile, n_in_p), lambda i: (i, 0)),        # x: batch-tiled
                resident(w0_p), resident(b0_p),
                resident(w1_p), resident(b1_p),
                resident(w2_p), resident(b2_p),
            ],
            out_specs=pl.BlockSpec((tile, n_out_p), lambda i: (i, 0)),
        ),
        compiler_params=pltpu.CompilerParams(
            dimension_semantics=("parallel",),
        ),
    )(x_p, w0_p, b0_p, w1_p, b1_p, w2_p, b2_p)

    # Strip batch / logit padding.
    return out[:B, :n_out].astype(out_dtype)


def init_mlp_params(key, sizes):
    """Deterministic init matching nn.Linear defaults (uniform +-1/sqrt(fan_in))."""
    params = []
    for d_in, d_out in zip(sizes[:-1], sizes[1:]):
        key, kw, kb = jax.random.split(key, 3)
        bound = 1.0 / jnp.sqrt(d_in)
        w = jax.random.uniform(kw, (d_in, d_out), jnp.float32, -bound, bound)
        # biases kept 2D (1, d_out) so TPU block rules are satisfied
        b = jax.random.uniform(kb, (1, d_out), jnp.float32, -bound, bound)
        params.append((w, b))
    return params


def reference_forward(x, params):
    """Pure-JAX f32 reference (matches the PyTorch MLP forward)."""
    (w0, b0), (w1, b1), (w2, b2) = params
    h = jnp.maximum(x @ w0 + b0, 0.0)
    h = jnp.maximum(h @ w1 + b1, 0.0)
    return h @ w2 + b2


if __name__ == "__main__":
    # MNIST-like config: n_inputs=784, n_layers=2, n_hiddens=128, n_outputs=10
    batch, n_inputs, n_hiddens, n_layers, n_outputs = 512, 784, 128, 2, 10
    sizes = [n_inputs] + [n_hiddens] * n_layers + [n_outputs]

    key = jax.random.PRNGKey(0)
    key, kx = jax.random.split(key)
    x = jax.random.normal(kx, (batch, n_inputs), jnp.float32)
    params = init_mlp_params(key, sizes)

    out = net_forward(x, params, tile_b=256)
    out = jax.block_until_ready(out)

    ref = reference_forward(x, params)
    assert out.shape == (batch, n_outputs)
    # bf16 MXU operands with f32 accumulation -> loose-but-tight-enough tolerance
    assert jnp.allclose(out, ref, atol=5e-2, rtol=5e-2), \
        f"mismatch vs JAX reference (max abs err {jnp.max(jnp.abs(out - ref))})"

    print("KERNEL_OK")
</pallas_src>

<mosaic_0001>
module attributes {stable_mosaic.version = 11 : i64} {
  func.func @mlp_kernel(%arg0: i32, %arg1: memref<256x896xbf16, #tpu.memory_space<vmem>>, %arg2: memref<896x128xbf16, #tpu.memory_space<vmem>>, %arg3: memref<1x128xf32, #tpu.memory_space<vmem>>, %arg4: memref<128x128xbf16, #tpu.memory_space<vmem>>, %arg5: memref<1x128xf32, #tpu.memory_space<vmem>>, %arg6: memref<128x128xbf16, #tpu.memory_space<vmem>>, %arg7: memref<1x128xf32, #tpu.memory_space<vmem>>, %arg8: memref<256x128xf32, #tpu.memory_space<vmem>>) attributes {dimension_semantics = [#tpu.dimension_semantics<parallel>], iteration_bounds = array<i64: 2>, scalar_prefetch = 0 : i64, scratch_operands = 0 : i64, tpu.core_type = #tpu.core_type<tc>, window_params = [{transform_indices = @transform_0, window_bounds = array<i64: 256, 896>}, {pipeline_mode = #tpu.pipeline_mode<synchronous>, transform_indices = @transform_1, window_bounds = array<i64: 896, 128>}, {pipeline_mode = #tpu.pipeline_mode<synchronous>, transform_indices = @transform_2, window_bounds = array<i64: 1, 128>}, {pipeline_mode = #tpu.pipeline_mode<synchronous>, transform_indices = @transform_3, window_bounds = array<i64: 128, 128>}, {pipeline_mode = #tpu.pipeline_mode<synchronous>, transform_indices = @transform_4, window_bounds = array<i64: 1, 128>}, {pipeline_mode = #tpu.pipeline_mode<synchronous>, transform_indices = @transform_5, window_bounds = array<i64: 128, 128>}, {pipeline_mode = #tpu.pipeline_mode<synchronous>, transform_indices = @transform_6, window_bounds = array<i64: 1, 128>}, {transform_indices = @transform_7, window_bounds = array<i64: 256, 128>}]} {
    %c0 = arith.constant 0 : index
    %c0_0 = arith.constant 0 : index
    %0 = vector.load %arg1[%c0, %c0_0] : memref<256x896xbf16, #tpu.memory_space<vmem>>, vector<256x896xbf16>
    %c0_1 = arith.constant 0 : index
    %c0_2 = arith.constant 0 : index
    %1 = vector.load %arg2[%c0_1, %c0_2] : memref<896x128xbf16, #tpu.memory_space<vmem>>, vector<896x128xbf16>
    %cst = arith.constant dense<0.000000e+00> : vector<256x128xf32>
    %2 = tpu.matmul %0, %1, %cst {dimension_numbers = #tpu.dot_dimension_numbers<[1], [0], [0], [1], [0, 0, 1, 1], [], []>} : vector<256x896xbf16>, vector<896x128xbf16>, vector<256x128xf32> -> vector<256x128xf32>
    %c0_3 = arith.constant 0 : index
    %c0_4 = arith.constant 0 : index
    %3 = vector.load %arg3[%c0_3, %c0_4] : memref<1x128xf32, #tpu.memory_space<vmem>>, vector<1x128xf32>
    %4 = vector.broadcast %3 : vector<1x128xf32> to vector<256x128xf32>
    %5 = arith.addf %2, %4 : vector<256x128xf32>
    %cst_5 = arith.constant 0.000000e+00 : f32
    %6 = vector.broadcast %cst_5 : f32 to vector<256x128xf32>
    %7 = arith.maximumf %5, %6 : vector<256x128xf32>
    %8 = arith.truncf %7 : vector<256x128xf32> to vector<256x128xbf16>
    %c0_6 = arith.constant 0 : index
    %c0_7 = arith.constant 0 : index
    %9 = vector.load %arg4[%c0_6, %c0_7] : memref<128x128xbf16, #tpu.memory_space<vmem>>, vector<128x128xbf16>
    %cst_8 = arith.constant dense<0.000000e+00> : vector<256x128xf32>
    %10 = tpu.matmul %8, %9, %cst_8 {dimension_numbers = #tpu.dot_dimension_numbers<[1], [0], [0], [1], [0, 0, 1, 1], [], []>} : vector<256x128xbf16>, vector<128x128xbf16>, vector<256x128xf32> -> vector<256x128xf32>
    %c0_9 = arith.constant 0 : index
    %c0_10 = arith.constant 0 : index
    %11 = vector.load %arg5[%c0_9, %c0_10] : memref<1x128xf32, #tpu.memory_space<vmem>>, vector<1x128xf32>
    %12 = vector.broadcast %11 : vector<1x128xf32> to vector<256x128xf32>
    %13 = arith.addf %10, %12 : vector<256x128xf32>
    %cst_11 = arith.constant 0.000000e+00 : f32
    %14 = vector.broadcast %cst_11 : f32 to vector<256x128xf32>
    %15 = arith.maximumf %13, %14 : vector<256x128xf32>
    %16 = arith.truncf %15 : vector<256x128xf32> to vector<256x128xbf16>
    %c0_12 = arith.constant 0 : index
    %c0_13 = arith.constant 0 : index
    %17 = vector.load %arg6[%c0_12, %c0_13] : memref<128x128xbf16, #tpu.memory_space<vmem>>, vector<128x128xbf16>
    %cst_14 = arith.constant dense<0.000000e+00> : vector<256x128xf32>
    %18 = tpu.matmul %16, %17, %cst_14 {dimension_numbers = #tpu.dot_dimension_numbers<[1], [0], [0], [1], [0, 0, 1, 1], [], []>} : vector<256x128xbf16>, vector<128x128xbf16>, vector<256x128xf32> -> vector<256x128xf32>
    %c0_15 = arith.constant 0 : index
    %c0_16 = arith.constant 0 : index
    %19 = vector.load %arg7[%c0_15, %c0_16] : memref<1x128xf32, #tpu.memory_space<vmem>>, vector<1x128xf32>
    %20 = vector.broadcast %19 : vector<1x128xf32> to vector<256x128xf32>
    %21 = arith.addf %18, %20 : vector<256x128xf32>
    %c0_17 = arith.constant 0 : index
    %c0_18 = arith.constant 0 : index
    %22 = vector.load %arg8[%c0_17, %c0_18] : memref<256x128xf32, #tpu.memory_space<vmem>>, vector<256x128xf32>
    tpu.vector_store %arg8[%c0_17, %c0_18], %21 {strides = array<i32>} : memref<256x128xf32, #tpu.memory_space<vmem>>, vector<256x128xf32>,
    return
  }
  func.func @transform_0(%arg0: i32) -> (i32, i32) {
    %c0_i32 = arith.constant 0 : i32
    %c0_i32_0 = arith.constant 0 : i32
    return %arg0, %c0_i32 : i32, i32
  }
  func.func @transform_1(%arg0: i32) -> (i32, i32) {
    %c0_i32 = arith.constant 0 : i32
    %c0_i32_0 = arith.constant 0 : i32
    %c0_i32_1 = arith.constant 0 : i32
    return %c0_i32, %c0_i32_0 : i32, i32
  }
  func.func @transform_2(%arg0: i32) -> (i32, i32) {
    %c0_i32 = arith.constant 0 : i32
    %c0_i32_0 = arith.constant 0 : i32
    %c0_i32_1 = arith.constant 0 : i32
    return %c0_i32, %c0_i32_0 : i32, i32
  }
  func.func @transform_3(%arg0: i32) -> (i32, i32) {
    %c0_i32 = arith.constant 0 : i32
    %c0_i32_0 = arith.constant 0 : i32
    %c0_i32_1 = arith.constant 0 : i32
    return %c0_i32, %c0_i32_0 : i32, i32
  }
  func.func @transform_4(%arg0: i32) -> (i32, i32) {
    %c0_i32 = arith.constant 0 : i32
    %c0_i32_0 = arith.constant 0 : i32
    %c0_i32_1 = arith.constant 0 : i32
    return %c0_i32, %c0_i32_0 : i32, i32
  }
  func.func @transform_5(%arg0: i32) -> (i32, i32) {
    %c0_i32 = arith.constant 0 : i32
    %c0_i32_0 = arith.constant 0 : i32
    %c0_i32_1 = arith.constant 0 : i32
    return %c0_i32, %c0_i32_0 : i32, i32
  }
  func.func @transform_6(%arg0: i32) -> (i32, i32) {
    %c0_i32 = arith.constant 0 : i32
    %c0_i32_0 = arith.constant 0 : i32
    %c0_i32_1 = arith.constant 0 : i32
    return %c0_i32, %c0_i32_0 : i32, i32
  }
  func.func @transform_7(%arg0: i32) -> (i32, i32) {
    %c0_i32 = arith.constant 0 : i32
    %c0_i32_0 = arith.constant 0 : i32
    return %arg0, %c0_i32 : i32, i32
  }
}

</mosaic_0001>

<bundles_post_ra>
// kernel: tpu_custom_call.1
= control target key start
LH: loop header
LB: loop body
LE: loop exit
PB: predicated region body
PF: predicated region fallthrough
CT: control target
= control target key end

     0   :  { %12 = vsyncpa [#allocation3], 0  ;;  %s4956_s0 = inlined_call_operand.hbm [shape: bf16[512,896], index: 0, kind: input, shape index: {}]   ;;  %s4957_s1 = inlined_call_operand.hbm [shape: bf16[896,128], index: 1, kind: input, shape index: {}]   ;;  %s4958_s2 = inlined_call_operand.vmem [shape: f32[1,128], index: 2, kind: input, shape index: {}]   ;;  %s4959_s3 = inlined_call_operand.hbm [shape: bf16[128,128], index: 3, kind: input, shape index: {}]   ;;  %s4960_s4 = inlined_call_operand.vmem [shape: f32[1,128], index: 4, kind: input, shape index: {}]   ;;  %s4961_s5 = inlined_call_operand.hbm [shape: bf16[128,128], index: 5, kind: input, shape index: {}]   ;;  %s4962_s6 = inlined_call_operand.vmem [shape: f32[1,128], index: 6, kind: input, shape index: {}]   ;;  %s4963_s7 = inlined_call_operand.hbm [shape: f32[512,128], index: 7, kind: output, shape index: {}]  }
   0x1   :  { %14 = vsyncpa [#allocation3 + $0x1], 0 }
   0x2   :  { %15 = vsyncpa [#allocation6], 0 }
   0x3   :  { %16 = vsyncpa [#allocation9], 0 }
   0x4   :  { %17 = vsyncpa [#allocation4], 0 }
   0x5   :  { %19 = vsyncpa [#allocation4 + $0x1], 0  ;;  %s4190_s24 = smov 0   ;;  %s4192_s25 = smov 0  }
   0x6   :  { %s4194_s26 = smov 0   ;;  %s4196_s27 = smov 0  }
   0x7 LB: > { %s4211_s28 = sadd.s32 4294967295, %s4137_s27   ;;  %s2856_s29 = sadd.s32 4294967294, %s4137_s27   ;;  %s4137_s27 = sphi %s4196_s27, %s4989_s27   ;;  %s4133_s26 = sphi %s4194_s26, %s4988_s26   ;;  %s4129_s25 = sphi %s4192_s25, %s4987_s25   ;;  %s4125_s24 = sphi %s4190_s24, %s4986_s24  }
   0x8   : > { %p45_p0 = scmp.ne.s32.totalorder %s4129_s25, %s4125_s24  ;;  %p4964_p1 = scmp.eq.s32.totalorder %s4211_s28, 0 }
   0x9   : > { %p201_p3 = scmp.eq.s32.totalorder %s2856_s29, 1  ;;  %p2857_p5 = scmp.ge.s32.totalorder %s4137_s27, 1 }
   0xa   : > { %p4220_p4 = por %p4964_p1, %p45_p0  ;;  %p208_p7 = scmp.lt.s32.totalorder %s4137_s27, 3 }
   0xb   : > { %p4225_p6 = por %p201_p3, %p45_p0  ;;  %s4139_s10 = smov [#allocation5]  }
   0xc   : > { %s4968_s30 = scalar_select %p4220_p4, 1, 0 }
   0xd   : > { %s4969_s8 = scalar_select %p4225_p6, 1, 0 }
   0xe   : > { %p4230_p8 = pnand %p2857_p5, %p208_p7  ;;  %s220_s11 = sshll.u32 %s4139_s10, 4  ;;  %s4234_s11 = int_to_ptr.vmem [resolvable:$true] %s220_s11 }
   0xf   : > { %4970 = sst [smem:[#allocation15_spill]] %s4969_s8  ;;  %s4140_s13 = smov [#allocation7]  }
  0x10   : > { %s4971_s9 = scalar_select %p4230_p8, 1, 0 }
  0x11   : > { %p3650_p9 = pneg %p4230_p8  ;;  %s236_s14 = sshll.u32 %s4140_s13, 4  ;;  %s4245_s14 = int_to_ptr.vmem [resolvable:$true] %s236_s14 }
  0x12   : > { %s4141_s15 = smov [#allocation8]   ;;  %s3949_s19 = scalar_lea.hbm %s4957_s1, 7168 }
  0x13   : > { %p4241_p11 = pnand %p3650_p9, %p4964_p1  ;;  %s4247_s16 = sshll.u32 %s4141_s15, 4  ;;  %s253_s16 = int_to_ptr.vmem [resolvable:$true] %s4247_s16 }
  0x14   : > { %p3950_p12 = scmp.ne.s32.totalorder %s4957_s1, %s3949_s19  ;;  %p3956_p5 = scmp.lt.u32.totalorder %s3949_s19, %s4957_s1 }
  0x15   : > { %p4257_p13 = pneg %p4241_p11 }
  0x17   : > { %p3952_p0 = pnand %p4257_p13, %p3950_p12 }
  0x19   : > { %p3953_p3 = pneg %p3952_p0 }
  0x1b   : > { %p3958_p7 = pnand %p3956_p5, %p3953_p3 }
  0x1d   : > { %3961 = shalt.err (!%p3958_p7)
}
  0x1e   : > { %s3962_s10 = scalar_lea.vmem %s4234_s11, 7168  ;;  %p3970_p2 = scmp.lt.s32.totalorder %s4234_s11, %s4234_s11 }
  0x1f   : > { %p3963_p9 = scmp.ne.s32.totalorder %s4234_s11, %s3962_s10  ;;  %p3971_p6 = scmp.lt.s32.totalorder %s3962_s10, %s3962_s10 }
  0x21   : > { %p3965_p10 = pnand %p3963_p9, %p4257_p13  ;;  %p3972_p12 = por %p3971_p6, %p3970_p2 }
  0x23   : > { %p3966_p1 = pneg %p3965_p10 }
  0x25   : > { %p3973_p0 = pnand %p3972_p12, %p3966_p1 }
  0x27   : > { %3976 = shalt.err (!%p3973_p0)
}
  0x28   : > { %s4142_s13 = smov 64   ;;  %s4143_s15 = smov 4  }
  0x29   : > { %3653 = dma.hbm_to_vmem [thread:$0]  (!%p4241_p11), %s4957_s1, 7168, %s4234_s11, [#allocation6], %s4142_s13, %s4142_s13, %s4143_s15  }
  0x2a   : > { %s3977_s21 = scalar_lea.hbm %s4959_s3, 1024 }
  0x2b   : > { %p3978_p1 = scmp.ne.s32.totalorder %s4959_s3, %s3977_s21  ;;  %p3984_p10 = scmp.lt.u32.totalorder %s3977_s21, %s4959_s3 }
  0x2d   : > { %p3980_p2 = pnand %p3978_p1, %p4257_p13 }
  0x2f   : > { %p3981_p6 = pneg %p3980_p2 }
  0x31   : > { %p3986_p3 = pnand %p3984_p10, %p3981_p6 }
  0x33   : > { %3989 = shalt.err (!%p3986_p3)
}
  0x34   : > { %s3990_s11 = scalar_lea.vmem %s4245_s14, 1024  ;;  %p3998_p12 = scmp.lt.s32.totalorder %s4245_s14, %s4245_s14 }
  0x35   : > { %p3991_p5 = scmp.ne.s32.totalorder %s4245_s14, %s3990_s11  ;;  %p3999_p0 = scmp.lt.s32.totalorder %s3990_s11, %s3990_s11 }
  0x37   : > { %p3993_p7 = pnand %p3991_p5, %p4257_p13  ;;  %p4000_p1 = por %p3999_p0, %p3998_p12 }
  0x39   : > { %p3994_p9 = pneg %p3993_p7 }
  0x3b   : > { %p4001_p2 = pnand %p4000_p1, %p3994_p9 }
  0x3d   : > { %4004 = shalt.err (!%p4001_p2)
}
  0x3e   : > { %3656 = dma.hbm_to_vmem [thread:$0]  (!%p4241_p11), %s4959_s3, 1024, %s4245_s14, [#allocation6], %s4142_s13, %s4142_s13, %s4143_s15  }
  0x3f   : > { %s4005_s20 = scalar_lea.hbm %s4961_s5, 1024 }
  0x40   : > { %p4006_p6 = scmp.ne.s32.totalorder %s4961_s5, %s4005_s20  ;;  %p4012_p5 = scmp.lt.u32.totalorder %s4005_s20, %s4961_s5 }
  0x42   : > { %p4008_p10 = pnand %p4006_p6, %p4257_p13 }
  0x44   : > { %p4009_p3 = pneg %p4008_p10 }
  0x46   : > { %p4014_p7 = pnand %p4012_p5, %p4009_p3 }
  0x48   : > { %4017 = shalt.err (!%p4014_p7)
}
  0x49   : > { %s4018_s11 = scalar_lea.vmem %s253_s16, 1024  ;;  %p4026_p1 = scmp.lt.s32.totalorder %s253_s16, %s253_s16 }
  0x4a   : > { %p4019_p9 = scmp.ne.s32.totalorder %s253_s16, %s4018_s11  ;;  %p4027_p2 = scmp.lt.s32.totalorder %s4018_s11, %s4018_s11 }
  0x4c   : > { %p4021_p12 = pnand %p4019_p9, %p4257_p13  ;;  %p4028_p4 = por %p4027_p2, %p4026_p1 }
  0x4e   : > { %p4022_p0 = pneg %p4021_p12 }
  0x50   : > { %p4029_p8 = pnand %p4028_p4, %p4022_p0 }
  0x52   : > { %4032 = shalt.err (!%p4029_p8)
}
  0x53   : > { %3659 = dma.hbm_to_vmem [thread:$0]  (!%p4241_p11), %s4961_s5, 1024, %s253_s16, [#allocation9], %s4142_s13, %s4142_s13, %s4143_s15  }
  0x54   : > { %s4330_s22 = sadd.s32 1, %s4137_s27   ;;  %s32_s17 = sadd.s32 1, %s4133_s26 }
  0x55   : > { %s29_s12 = ssub.s32 %s4137_s27, %s4330_s22  ;;  %p39_p8 = scmp.ne.s32.totalorder %s4133_s26, %s4129_s25 }
  0x56   : > { %p30_p4 = scmp.eq.s32.totalorder %s29_s12, 0  ;;  %p40_p13 = scmp.eq.s32.totalorder %s4137_s27, 0 }
  0x57   : > { %p3671_p6 = scmp.lt.s32.totalorder %s4137_s27, 2  ;;  %p4974_p3 = scmp.eq.s32.totalorder %s4211_s28, 1 }
  0x58   : > { %s4340_s18 = scalar_select %p30_p4, %s4133_s26, %s32_s17  }
  0x59   : > { %p41_p10 = por %p40_p13, %p39_p8  ;;  %p4344_p5 = por %p4974_p3, %p39_p8 }
  0x5a   : > { %s269_s20 = sand.u32 1, %s4133_s26   ;;  %s3632_s21 = smul.u32 14336, %s4137_s27 }
  0x5b   : > { %s3631_s16 = smul.u32 896, %s269_s20  ;;  %p4355_p11 = pnand %p3671_p6, %p41_p10 }
  0x5c   : > { %s4353_s23 = scalar_lea.hbm %s4956_s0, %s3632_s21  ;;  %s4361_s14 = scalar_lea.sflag [#allocation3], %s269_s20 }
  0x5d   : > { %s273_s10 = scalar_lea.vmem [#allocation2], %s3631_s16  ;;  %s4033_s8 = scalar_lea.hbm %s4353_s23, 14336 }
  0x5e   : > { %s281_s11 = sshll.u32 %s273_s10, 4  ;;  %p4034_p7 = scmp.ne.s32.totalorder %s4353_s23, %s4033_s8  ;;  %s4359_s11 = int_to_ptr.vmem [resolvable:$true] %s281_s11 }
  0x5f   : > { %p4035_p9 = pneg %p4355_p11  ;;  %s4038_s21 = scalar_lea.hbm %s4956_s0, 28672 }
  0x60   : > { %p4039_p1 = scmp.lt.u32.totalorder %s4353_s23, %s4956_s0  ;;  %p4040_p2 = scmp.lt.u32.totalorder %s4038_s21, %s4033_s8 }
  0x61   : > { %p4036_p12 = pnand %p4035_p9, %p4034_p7  ;;  %p4042_p8 = scmp.lt.u32.totalorder %s4033_s8, %s4353_s23 }
  0x62   : > { %p4041_p4 = por %p4040_p2, %p4039_p1 }
  0x63   : > { %p4037_p0 = pneg %p4036_p12 }
  0x64   : > { %p4043_p13 = por %p4042_p8, %p4041_p4 }
  0x66   : > { %p4044_p6 = pnand %p4043_p13, %p4037_p0 }
  0x68   : > { %4047 = shalt.err (!%p4044_p6)
}
  0x69   : > { %s4048_s20 = scalar_lea.vmem %s4359_s11, 14336  ;;  %s4144_s16 = smov [#allocation2]  }
  0x6a   : > { %p4049_p10 = scmp.ne.s32.totalorder %s4359_s11, %s4048_s20  ;;  %s4053_s10 = sshll.u32 %s4144_s16, 4  ;;  %s4054_s10 = int_to_ptr.vmem [resolvable:$false] %s4053_s10 }
  0x6b   : > { %s4055_s12 = scalar_lea.vmem %s4054_s10, 28672  ;;  %p4056_p12 = scmp.lt.s32.totalorder %s4359_s11, %s4054_s10 }
  0x6c   : > { %p4051_p3 = pnand %p4049_p10, %p4035_p9  ;;  %p4057_p1 = scmp.lt.s32.totalorder %s4055_s12, %s4048_s20 }
  0x6e   : > { %p4052_p7 = pneg %p4051_p3  ;;  %p4058_p2 = por %p4057_p1, %p4056_p12 }
  0x70   : > { %p4059_p4 = pnand %p4058_p2, %p4052_p7 }
  0x72   : > { %4062 = shalt.err (!%p4059_p4)
}
  0x73   : > { %s4145_s8 = smov 448   ;;  %s4146_s17 = smov 28  }
  0x74   : > { %3663 = dma.hbm_to_vmem [thread:$0]  (!%p4355_p11), %s4353_s23, 14336, %s4359_s11, %s4361_s14, %s4145_s8, %s4145_s8, %s4146_s17  }
  0x75   : > { %p4977_p9 = scmp.ne.s32.totalorder %s4971_s9, 0 }
  0x76   : > { %s4392_s21 = sand.u32 (!%p4977_p9), 1, %s4129_s25   ;;  %p4978_p0 = scmp.ne.s32.totalorder (!%p4977_p9), %s4968_s30, 0 }
  0x77   : > { %293 = sbr.rel (%p4977_p9) target bundleno = 1062 (0x426), region = 48  ;;  %s296_s15 = scalar_lea.sflag (!%p4977_p9), [#allocation3], %s4392_s21 }
  0x78   : > { %s3633_s13 = smul.u32 (!%p4977_p9), 896, %s4392_s21 }
  0x7a   : > { %s4396_s20 = scalar_lea.vmem (!%p4977_p9), [#allocation2], %s3633_s13 }
  0x7e   : > { %4108 = dma.done.wait (%p4978_p0), %s296_s15, 14336  }
  0x7f   : > { %4110 = vsyncadd (%p4978_p0), %s296_s15, 4294952960  ;;  %p4979_p11 = scmp.eq.s32.totalorder %s4211_s28, 0 }
  0x81   : > { %4112 = dma.done.wait (%p4979_p11), [#allocation6], 8192   ;;  %p4980_p8 = pmov %p4979_p11 }
  0x83   : > { %4114 = vsyncadd (%p4980_p8), [#allocation6], 4294959104  ;;  %p4981_p13 = pmov %p4980_p8 }
  0x84   : > { %p4982_p6 = pmov %p4980_p8 }
  0x85   : > { %4116 = dma.done.wait (%p4981_p13), [#allocation9], 1024  }
  0x86   : > { %4118 = vsyncadd (%p4982_p6), [#allocation9], 4294966272  ;;  %v3717_v0 = vld [vmem:[#allocation5 + $0x40] sm:$0xff]   ;;  %v3719_v2 = vld [vmem:[#allocation5 + $0x48] sm:$0xff]   ;;  %s2869_s11 = sshll.u32 %s4392_s21, 8  ;;  %s3062_s12 = sshll.u32 %s4211_s28, 12 }
  0x87   : > { %v3718_v1 = vld [vmem:[#allocation5] sm:$0xff]   ;;  %3063 = vmatprep.subr.bf16.mxu0 %v3717_v0  ;;  %3615 = vmatprep.subr.bf16.mxu1 %v3717_v0  ;;  %v3720_v3 = vld [vmem:[#allocation5 + $0x8] sm:$0xff]   ;;  %v3721_v4 = vld [vmem:[#allocation5 + $0x50] sm:$0xff]   ;;  %s4841_s10 = scalar_lea.vmem [#allocation10], %s2869_s11  ;;  %s4906_s15 = scalar_lea.hbm %s4963_s7, %s3062_s12 }
  0x88   : > { %3064 = vmatpush3.bf16.msra.mxu0 %v3718_v1  ;;  %3623 = vmatpush3.bf16.msra.mxu1 %v3718_v1  ;;  %v3722_v5 = vld [vmem:[#allocation5 + $0x10] sm:$0xff]   ;;  %v3723_v6 = vld [vmem:[#allocation5 + $0x58] sm:$0xff]   ;;  %v3725_v8 = vld [vmem:[#allocation5 + $0x60] sm:$0xff]   ;;  %s2754_s8 = sshll.u32 %s4841_s10, 4  ;;  %s2741_s28 = scalar_lea.sflag [#allocation4], %s4392_s21  ;;  %s4908_s8 = int_to_ptr.vmem [resolvable:$true] %s2754_s8 }
  0x89   : > { %3065 = vmatprep.subr.bf16.mxu0 %v3719_v2  ;;  %3616 = vmatprep.subr.bf16.mxu1 %v3719_v2  ;;  %v3724_v7 = vld [vmem:[#allocation5 + $0x18] sm:$0xff]   ;;  %v3726_v9 = vld [vmem:[#allocation5 + $0x20] sm:$0xff]   ;;  %v3727_v10 = vld [vmem:[#allocation5 + $0x68] sm:$0xff]   ;;  %s4147_s30 = smov [#allocation10]  }
  0x8a   : > { %v3735_v11 = vld [vmem:[%s4396_s20 + $0x4] ss:$28 sps:$4 sm:$0xff]   ;;  %v3728_v13 = vld [vmem:[#allocation5 + $0x28] sm:$0xff]   ;;  %v3729_v14 = vld [vmem:[#allocation5 + $0x70] sm:$0xff]   ;;  %s4067_s9 = sshll.u32 %s4147_s30, 4  ;;  %s4068_s9 = int_to_ptr.vmem [resolvable:$false] %s4067_s9 }
  0x8b   : > { %v3738_v12 = vld [vmem:[%s4396_s20 + $0x2a4] ss:$28 sps:$4 sm:$0xff]   ;;  %1536 = vmatprep.mubr.bf16.mxu0 %v3735_v11  ;;  %v3730_v15 = vld [vmem:[#allocation5 + $0x30] sm:$0xff]   ;;  %v3731_v16 = vld [vmem:[#allocation5 + $0x78] sm:$0xff]   ;;  %s4069_s23 = scalar_lea.vmem %s4068_s9, 8192  ;;  %p4070_p12 = scmp.lt.s32.totalorder %s4908_s8, %s4068_s9 }
  0x8c   : > { %3066 = vmatpush3.bf16.msra.mxu0 %v3720_v3  ;;  %3624 = vmatpush3.bf16.msra.mxu1 %v3720_v3  ;;  %v3732_v17 = vld [vmem:[#allocation5 + $0x38] sm:$0xff]   ;;  %v3739_v18 = vld [vmem:[#allocation5 + $0xc0] sm:$0xff]   ;;  %v3743_v24 = vld [vmem:[#allocation5 + $0xc8] sm:$0xff]  }
  0x8d   : > { %3067 = vmatprep.subr.bf16.mxu0 %v3721_v4  ;;  %3617 = vmatprep.subr.bf16.mxu1 %v3721_v4  ;;  %v3733_v19 = vld [vmem:[%s4396_s20] ss:$28 sps:$4 sm:$0xff]   ;;  %v3754_v27 = vld [vmem:[#allocation5 + $0x148] sm:$0xff]   ;;  %v3749_v30 = vld [vmem:[%s4396_s20 + $0x38] ss:$28 sps:$4 sm:$0xff]  }
  0x8e   : > { %1632 = vmatprep.mubr.bf16.mxu1 %v3738_v12  ;;  %v3736_v20 = vld [vmem:[%s4396_s20 + $0x2a0] ss:$28 sps:$4 sm:$0xff]   ;;  %v3744_v28 = vld [vmem:[#allocation5 + $0x88] sm:$0xff]   ;;  %v3750_v31 = vld [vmem:[%s4396_s20 + $0x2d8] ss:$28 sps:$4 sm:$0xff]  }
  0x8f   : > { %v3740_v21 = vld [vmem:[#allocation5 + $0x140] sm:$0xff]   ;;  %v3745_v25 = vld [vmem:[%s4396_s20 + $0x3c] ss:$28 sps:$4 sm:$0xff]   ;;  %v3756_v29 = vld [vmem:[#allocation5 + $0x108] sm:$0xff]  }
  0x90   : > { %3068 = vmatpush3.bf16.msra.mxu0 %v3722_v5  ;;  %3625 = vmatpush3.bf16.msra.mxu1 %v3722_v5  ;;  %v3741_v22 = vld [vmem:[#allocation5 + $0x80] sm:$0xff]   ;;  %v3747_v26 = vld [vmem:[%s4396_s20 + $0x2dc] ss:$28 sps:$4 sm:$0xff]   ;;  %v3751_v32 = vld [vmem:[#allocation5 + $0xd0] sm:$0xff]  }
  0x91   : > { %3069 = vmatprep.subr.bf16.mxu0 %v3723_v6  ;;  %3618 = vmatprep.subr.bf16.mxu1 %v3723_v6  ;;  %v3742_v23 = vld [vmem:[#allocation5 + $0x100] sm:$0xff]   ;;  %v3752_v33 = vld [vmem:[#allocation5 + $0x90] sm:$0xff]   ;;  %v3753_v34 = vld [vmem:[#allocation5 + $0xd8] sm:$0xff]  }
  0x92   : > { %v3757_v35 = vld [vmem:[%s4396_s20 + $0x74] ss:$28 sps:$4 sm:$0xff]   ;;  %v3755_v37 = vld [vmem:[#allocation5 + $0x98] sm:$0xff]   ;;  %v3763_v38 = vld [vmem:[#allocation5 + $0xe0] sm:$0xff]  }
  0x93   : > { %v3759_v36 = vld [vmem:[%s4396_s20 + $0x314] ss:$28 sps:$4 sm:$0xff]   ;;  %v3764_v42 = vld [vmem:[#allocation5 + $0xa0] sm:$0xff]   ;;  %v3765_v43 = vld [vmem:[#allocation5 + $0xe8] sm:$0xff]  }
  0x94   : > { %3070 = vmatpush3.bf16.msra.mxu0 %v3724_v7  ;;  %3626 = vmatpush3.bf16.msra.mxu1 %v3724_v7  ;;  %v3761_v39 = vld [vmem:[%s4396_s20 + $0x70] ss:$28 sps:$4 sm:$0xff]   ;;  %v3771_v48 = vld [vmem:[%s4396_s20 + $0xa8] ss:$28 sps:$4 sm:$0xff]   ;;  %v3786_v52 = vld [vmem:[#allocation5 + $0x158] sm:$0xff]  }
  0x95   : > { %3071 = vmatprep.subr.bf16.mxu0 %v3725_v8  ;;  %3619 = vmatprep.subr.bf16.mxu1 %v3725_v8  ;;  %v3762_v40 = vld [vmem:[%s4396_s20 + $0x310] ss:$28 sps:$4 sm:$0xff]   ;;  %v3772_v49 = vld [vmem:[%s4396_s20 + $0x348] ss:$28 sps:$4 sm:$0xff]   ;;  %v3787_v53 = vld [vmem:[#allocation5 + $0x118] sm:$0xff]  }
  0x96   : > { %v3774_v41 = vld [vmem:[#allocation5 + $0x150] sm:$0xff]   ;;  %v3767_v45 = vld [vmem:[%s4396_s20 + $0xac] ss:$28 sps:$4 sm:$0xff]   ;;  %v3779_v54 = vld [vmem:[%s4396_s20 + $0xe4] ss:$28 sps:$4 sm:$0xff]  }
  0x97   : > { %v3776_v44 = vld [vmem:[#allocation5 + $0x110] sm:$0xff]   ;;  %v3769_v46 = vld [vmem:[%s4396_s20 + $0x34c] ss:$28 sps:$4 sm:$0xff]   ;;  %v3777_v55 = vld [vmem:[#allocation5 + $0xf8] sm:$0xff]  }
  0x98   : > { %3072 = vmatpush3.bf16.msra.mxu0 %v3726_v9  ;;  %3627 = vmatpush3.bf16.msra.mxu1 %v3726_v9  ;;  %v3766_v47 = vld [vmem:[#allocation5 + $0xa8] sm:$0xff]   ;;  %v3773_v50 = vld [vmem:[#allocation5 + $0xf0] sm:$0xff]   ;;  %v3778_v57 = vld [vmem:[#allocation5 + $0xb8] sm:$0xff]  }
  0x99   : > { %3073 = vmatprep.subr.bf16.mxu0 %v3727_v10  ;;  %3620 = vmatprep.subr.bf16.mxu1 %v3727_v10  ;;  %v3775_v51 = vld [vmem:[#allocation5 + $0xb0] sm:$0xff]   ;;  %v3783_v56 = vld [vmem:[%s4396_s20 + $0xc] ss:$28 sps:$4 sm:$0xff]   ;;  %v3785_v58 = vld [vmem:[#allocation5 + $0x180] sm:$0xff]  }
  0x9a   : > { %v3781_v59 = vld [vmem:[%s4396_s20 + $0x8] ss:$28 sps:$4 sm:$0xff]   ;;  %v3784_v62 = vld [vmem:[%s4396_s20 + $0xe0] ss:$28 sps:$4 sm:$0xff]   ;;  %v3792_v4 = vld [vmem:[%s4396_s20 + $0x118] ss:$28 sps:$4 sm:$0xff]  }
  0x9b   : > { %v3800_v60 = vld [vmem:[#allocation5 + $0x160] sm:$0xff]   ;;  %v3788_v63 = vld [vmem:[%s4396_s20 + $0x11c] ss:$28 sps:$4 sm:$0xff]   ;;  %v3802_v1 = vld [vmem:[#allocation5 + $0x188] sm:$0xff]  }
  0x9c   : > { %3074 = vmatpush3.bf16.msra.mxu0 %v3728_v13  ;;  %3628 = vmatpush3.bf16.msra.mxu1 %v3728_v13  ;;  %v3801_v61 = vld [vmem:[#allocation5 + $0x120] sm:$0xff]   ;;  %v3809_v2 = vld [vmem:[#allocation5 + $0x168] sm:$0xff]   ;;  %v3794_v6 = vld [vmem:[%s4396_s20 + $0x154] ss:$28 sps:$4 sm:$0xff]  }
  0x9d   : > { %3075 = vmatprep.subr.bf16.mxu0 %v3729_v14  ;;  %3621 = vmatprep.subr.bf16.mxu1 %v3729_v14  ;;  %v3790_v0 = vld [vmem:[%s4396_s20 + $0x44] ss:$28 sps:$4 sm:$0xff]   ;;  %v3810_v3 = vld [vmem:[#allocation5 + $0x128] sm:$0xff]   ;;  %v3817_v7 = vld [vmem:[#allocation5 + $0x190] sm:$0xff]  }
  0x9e   : > { %v3793_v5 = vld [vmem:[%s4396_s20 + $0x40] ss:$28 sps:$4 sm:$0xff]   ;;  %v3824_v9 = vld [vmem:[#allocation5 + $0x170] sm:$0xff]   ;;  %v3803_v13 = vld [vmem:[%s4396_s20 + $0x18c] ss:$28 sps:$4 sm:$0xff]  }
  0x9f   : > { %v3796_v8 = vld [vmem:[%s4396_s20 + $0x7c] ss:$28 sps:$4 sm:$0xff]   ;;  %v3825_v10 = vld [vmem:[#allocation5 + $0x130] sm:$0xff]  }
  0xa0   : > { %3076 = vmatpush3.bf16.msra.mxu0 %v3730_v15  ;;  %3629 = vmatpush3.bf16.msra.mxu1 %v3730_v15  ;;  %v3798_v11 = vld [vmem:[%s4396_s20 + $0x150] ss:$28 sps:$4 sm:$0xff]   ;;  %v3799_v12 = vld [vmem:[%s4396_s20 + $0x78] ss:$28 sps:$4 sm:$0xff]  }
  0xa1   : > { %3077 = vmatprep.subr.bf16.mxu0 %v3731_v16  ;;  %3622 = vmatprep.subr.bf16.mxu1 %v3731_v16  ;;  %v3805_v14 = vld [vmem:[%s4396_s20 + $0xb4] ss:$28 sps:$4 sm:$0xff]   ;;  %v3832_v15 = vld [vmem:[#allocation5 + $0x198] sm:$0xff]  }
  0xa2   : > { %v3833_v16 = vld [vmem:[#allocation5 + $0x178] sm:$0xff]  }
  0xa4   : > { %3078 = vmatpush3.bf16.msra.mxu0 %v3732_v17  ;;  %3630 = vmatpush3.bf16.msra.mxu1 %v3732_v17  ;;  %v3834_v17 = vld [vmem:[#allocation5 + $0x138] sm:$0xff]  }
  0xa5   : > { %3175 = vmatprep.subr.bf16.mxu1 %v3739_v18  ;;  %3287 = vmatprep.subr.bf16.mxu0 %v3740_v21  ;;  %v3807_v18 = vld [vmem:[%s4396_s20 + $0x188] ss:$28 sps:$4 sm:$0xff]  }
  0xa6   : > { %v3813_v21 = vld [vmem:[%s4396_s20 + $0xec] ss:$28 sps:$4 sm:$0xff]  }
  0xa7   : > { %1537 = vmatmul.mubr.bf16.vlgmr.msra.gmra.mrb[0].mxu0 %v3733_v19  ;;  %1633 = vmatmul.mubr.bf16.vlgmr.msra.gmra.mrb[0].mxu1 %v3736_v20  ;;  %v3808_v19 = vld [vmem:[%s4396_s20 + $0xb0] ss:$28 sps:$4 sm:$0xff]   ;;  %v3811_v20 = vld [vmem:[%s4396_s20 + $0x1c4] ss:$28 sps:$4 sm:$0xff]  }
  0xa8   : > { %3176 = vmatpush3.bf16.msra.mxu1 %v3741_v22  ;;  %3288 = vmatpush3.bf16.msra.mxu0 %v3742_v23  ;;  %v3847_v22 = vld [vmem:[#allocation5 + $0x1a0] sm:$0xff]  }
  0xa9   : > { %3177 = vmatprep.subr.bf16.mxu1 %v3743_v24  ;;  %1544 = vmatprep.mubr.bf16.mxu0 %v3745_v25  ;;  %v3815_v23 = vld [vmem:[%s4396_s20 + $0x1c0] ss:$28 sps:$4 sm:$0xff]   ;;  %v3816_v24 = vld [vmem:[%s4396_s20 + $0xe8] ss:$28 sps:$4 sm:$0xff]  }
  0xaa   : > { %1640 = vmatprep.mubr.bf16.mxu1 %v3747_v26  ;;  %3289 = vmatprep.subr.bf16.mxu0 %v3754_v27  ;;  %v3860_v25 = vld [vmem:[#allocation5 + $0x1a8] sm:$0xff]   ;;  %v3818_v26 = vld [vmem:[%s4396_s20 + $0x1fc] ss:$28 sps:$4 sm:$0xff]   ;;  %v3820_v27 = vld [vmem:[%s4396_s20 + $0x124] ss:$28 sps:$4 sm:$0xff]  }
  0xac   : > { %3178 = vmatpush3.bf16.msra.mxu1 %v3744_v28  ;;  %3290 = vmatpush3.bf16.msra.mxu0 %v3756_v29  ;;  %v3873_v28 = vld [vmem:[#allocation5 + $0x1b0] sm:$0xff]  }
  0xad   : > { %3179 = vmatprep.subr.bf16.mxu1 %v3751_v32  ;;  %3291 = vmatprep.subr.bf16.mxu0 %v3774_v41  ;;  %v3822_v29 = vld [vmem:[%s4396_s20 + $0x1f8] ss:$28 sps:$4 sm:$0xff]  }
  0xae   : > { %v3828_v32 = vld [vmem:[%s4396_s20 + $0x15c] ss:$28 sps:$4 sm:$0xff]   ;;  %v3845_v41 = vld [vmem:[%s4396_s20 + $0x14] ss:$28 sps:$4 sm:$0xff]  }
  0xaf   : > { %1545 = vmatmul.mubr.bf16.gmra.mrb[4].mxu0 %v3749_v30  ;;  %1641 = vmatmul.mubr.bf16.gmra.mrb[4].mxu1 %v3750_v31  ;;  %v3823_v30 = vld [vmem:[%s4396_s20 + $0x120] ss:$28 sps:$4 sm:$0xff]   ;;  %v3826_v31 = vld [vmem:[%s4396_s20 + $0x234] ss:$28 sps:$4 sm:$0xff]  }
  0xb0   : > { %3180 = vmatpush3.bf16.msra.mxu1 %v3752_v33  ;;  %1552 = vmatprep.mubr.bf16.mxu0 %v3757_v35  ;;  %v3886_v33 = vld [vmem:[#allocation5 + $0x1b8] sm:$0xff]  }
  0xb1   : > { %3181 = vmatprep.subr.bf16.mxu1 %v3753_v34  ;;  %1648 = vmatprep.mubr.bf16.mxu1 %v3759_v36  ;;  %v3830_v34 = vld [vmem:[%s4396_s20 + $0x230] ss:$28 sps:$4 sm:$0xff]   ;;  %v3831_v35 = vld [vmem:[%s4396_s20 + $0x158] ss:$28 sps:$4 sm:$0xff]  }
  0xb2   : > { %3292 = vmatpush3.bf16.msra.mxu0 %v3776_v44  ;;  %v3835_v36 = vld [vmem:[%s4396_s20 + $0x26c] ss:$28 sps:$4 sm:$0xff]   ;;  %v3848_v44 = vld [vmem:[%s4396_s20 + $0x204] ss:$28 sps:$4 sm:$0xff]  }
  0xb3   : > { %3293 = vmatprep.subr.bf16.mxu0 %v3786_v52  ;;  %v3861_v52 = vld [vmem:[%s4396_s20 + $0x274] ss:$28 sps:$4 sm:$0xff]  }
  0xb4   : > { %3182 = vmatpush3.bf16.msra.mxu1 %v3755_v37  ;;  %v3837_v37 = vld [vmem:[%s4396_s20 + $0x194] ss:$28 sps:$4 sm:$0xff]  }
  0xb5   : > { %3183 = vmatprep.subr.bf16.mxu1 %v3763_v38  ;;  %v3839_v38 = vld [vmem:[%s4396_s20 + $0x268] ss:$28 sps:$4 sm:$0xff]  }
  0xb6   : > { %3294 = vmatpush3.bf16.msra.mxu0 %v3787_v53  ;;  %v3863_v53 = vld [vmem:[%s4396_s20 + $0xbc] ss:$28 sps:$4 sm:$0xff]  }
  0xb7   : > { %1553 = vmatmul.mubr.bf16.gmra.mrb[8].mxu0 %v3761_v39  ;;  %1649 = vmatmul.mubr.bf16.gmra.mrb[8].mxu1 %v3762_v40  ;;  %v3840_v39 = vld [vmem:[%s4396_s20 + $0x190] ss:$28 sps:$4 sm:$0xff]  }
  0xb8   : > { %3184 = vmatpush3.bf16.msra.mxu1 %v3764_v42  ;;  %1560 = vmatprep.mubr.bf16.mxu0 %v3767_v45  ;;  %v3841_v40 = vld [vmem:[%s4396_s20 + $0x1cc] ss:$28 sps:$4 sm:$0xff]  }
  0xb9   : > { %3185 = vmatprep.subr.bf16.mxu1 %v3765_v43  ;;  %1656 = vmatprep.mubr.bf16.mxu1 %v3769_v46  ;;  %v3843_v42 = vld [vmem:[%s4396_s20 + $0x10] ss:$28 sps:$4 sm:$0xff]   ;;  %v3846_v43 = vld [vmem:[%s4396_s20 + $0x1c8] ss:$28 sps:$4 sm:$0xff]   ;;  %v3852_v46 = vld [vmem:[%s4396_s20 + $0x200] ss:$28 sps:$4 sm:$0xff]  }
  0xba   : > { %3295 = vmatprep.subr.bf16.mxu0 %v3800_v60  ;;  %v3850_v45 = vld [vmem:[%s4396_s20 + $0x4c] ss:$28 sps:$4 sm:$0xff]   ;;  %v3874_v60 = vld [vmem:[%s4396_s20 + $0x2e4] ss:$28 sps:$4 sm:$0xff]  }
  0xbb   : > { %3296 = vmatpush3.bf16.msra.mxu0 %v3801_v61  ;;  %v3876_v61 = vld [vmem:[%s4396_s20 + $0x12c] ss:$28 sps:$4 sm:$0xff]  }
  0xbc   : > { %3186 = vmatpush3.bf16.msra.mxu1 %v3766_v47  ;;  %3297 = vmatprep.subr.bf16.mxu0 %v3809_v2  ;;  %v3853_v47 = vld [vmem:[%s4396_s20 + $0x48] ss:$28 sps:$4 sm:$0xff]   ;;  %v3884_v2 = vld [vmem:[%s4396_s20 + $0x318] ss:$28 sps:$4 sm:$0xff]  }
  0xbd   : > { %3187 = vmatprep.subr.bf16.mxu1 %v3773_v50  ;;  %v3858_v50 = vld [vmem:[%s4396_s20 + $0x238] ss:$28 sps:$4 sm:$0xff]  }
  0xbf   : > { %1561 = vmatmul.mubr.bf16.gmra.mrb[12].mxu0 %v3771_v48  ;;  %1657 = vmatmul.mubr.bf16.gmra.mrb[12].mxu1 %v3772_v49  ;;  %v3854_v48 = vld [vmem:[%s4396_s20 + $0x23c] ss:$28 sps:$4 sm:$0xff]   ;;  %v3856_v49 = vld [vmem:[%s4396_s20 + $0x84] ss:$28 sps:$4 sm:$0xff]  }
  0xc0   : > { %3188 = vmatpush3.bf16.msra.mxu1 %v3775_v51  ;;  %1568 = vmatprep.mubr.bf16.mxu0 %v3779_v54  ;;  %v3859_v51 = vld [vmem:[%s4396_s20 + $0x80] ss:$28 sps:$4 sm:$0xff]   ;;  %v3865_v54 = vld [vmem:[%s4396_s20 + $0x270] ss:$28 sps:$4 sm:$0xff]  }
  0xc1   : > { %3189 = vmatprep.subr.bf16.mxu1 %v3777_v55  ;;  %1697 = vmatprep.mubr.bf16.mxu1 %v3783_v56  ;;  %v3866_v55 = vld [vmem:[%s4396_s20 + $0xb8] ss:$28 sps:$4 sm:$0xff]   ;;  %v3867_v56 = vld [vmem:[%s4396_s20 + $0x2ac] ss:$28 sps:$4 sm:$0xff]  }
  0xc2   : > { %3298 = vmatpush3.bf16.msra.mxu0 %v3810_v3  ;;  %v3885_v3 = vld [vmem:[%s4396_s20 + $0x160] ss:$28 sps:$4 sm:$0xff]  }
  0xc3   : > { %3299 = vmatprep.subr.bf16.mxu0 %v3824_v9  ;;  %v3895_v9 = vld [vmem:[%s4396_s20 + $0x18] ss:$28 sps:$4 sm:$0xff]  }
  0xc4   : > { %3190 = vmatpush3.bf16.msra.mxu1 %v3778_v57  ;;  %v3869_v57 = vld [vmem:[%s4396_s20 + $0xf4] ss:$28 sps:$4 sm:$0xff]  }
  0xc5   : > { %3471 = vmatprep.subr.bf16.mxu1 %v3785_v58 }
  0xc6   : > { %3300 = vmatpush3.bf16.msra.mxu0 %v3825_v10  ;;  %v3896_v10 = vld [vmem:[%s4396_s20 + $0x1d0] ss:$28 sps:$4 sm:$0xff]  }
  0xc7   : > { %1569 = vmatmul.mubr.bf16.gmra.mrb[16].mxu0 %v3784_v62  ;;  %1698 = vmatmul.mubr.bf16.vlgmr.msra.gmra.mrb[16].mxu1 %v3781_v59  ;;  %v3872_v59 = vld [vmem:[%s4396_s20 + $0xf0] ss:$28 sps:$4 sm:$0xff]   ;;  %v3878_v62 = vld [vmem:[%s4396_s20 + $0x2e0] ss:$28 sps:$4 sm:$0xff]  }
  0xc8   : > { %3472 = vmatpush3.bf16.msra.mxu1 %v3785_v58  ;;  %1576 = vmatprep.mubr.bf16.mxu0 %v3788_v63  ;;  %v3871_v58 = vld [vmem:[%s4396_s20 + $0x2a8] ss:$28 sps:$4 sm:$0xff]  }
  0xc9   : > { %1705 = vmatprep.mubr.bf16.mxu1 %v3790_v0  ;;  %3473 = vmatprep.subr.bf16.mxu1 %v3802_v1  ;;  %v3879_v63 = vld [vmem:[%s4396_s20 + $0x128] ss:$28 sps:$4 sm:$0xff]   ;;  %v3880_v0 = vld [vmem:[%s4396_s20 + $0x31c] ss:$28 sps:$4 sm:$0xff]  }
  0xca   : > { %3301 = vmatprep.subr.bf16.mxu0 %v3833_v16  ;;  %v3903_v16 = vld [vmem:[%s4396_s20 + $0x244] ss:$28 sps:$4 sm:$0xff]  }
  0xcb   : > { %3302 = vmatpush3.bf16.msra.mxu0 %v3834_v17  ;;  %v3905_v17 = vld [vmem:[%s4396_s20 + $0xf8] ss:$28 sps:$4 sm:$0xff]  }
  0xcc   : > { %3474 = vmatpush3.bf16.msra.mxu1 %v3802_v1  ;;  %v3882_v1 = vld [vmem:[%s4396_s20 + $0x164] ss:$28 sps:$4 sm:$0xff]  }
  0xcd   : > { %3475 = vmatprep.subr.bf16.mxu1 %v3817_v7 }
  0xcf   : > { %1577 = vmatmul.mubr.bf16.gmra.mrb[20].mxu0 %v3792_v4  ;;  %1706 = vmatmul.mubr.bf16.gmra.mrb[20].mxu1 %v3793_v5  ;;  %v3887_v4 = vld [vmem:[%s4396_s20 + $0x354] ss:$28 sps:$4 sm:$0xff]   ;;  %v3889_v5 = vld [vmem:[%s4396_s20 + $0x19c] ss:$28 sps:$4 sm:$0xff]  }
  0xd0   : > { %1584 = vmatprep.mubr.bf16.mxu0 %v3794_v6  ;;  %1713 = vmatprep.mubr.bf16.mxu1 %v3796_v8  ;;  %v3891_v6 = vld [vmem:[%s4396_s20 + $0x350] ss:$28 sps:$4 sm:$0xff]  }
  0xd1   : > { %3476 = vmatpush3.bf16.msra.mxu1 %v3817_v7  ;;  %v3892_v7 = vld [vmem:[%s4396_s20 + $0x198] ss:$28 sps:$4 sm:$0xff]  }
  0xd2   : > { %3477 = vmatprep.subr.bf16.mxu1 %v3832_v15  ;;  %v3893_v8 = vld [vmem:[%s4396_s20 + $0x1d4] ss:$28 sps:$4 sm:$0xff]  }
  0xd5   : > { %3478 = vmatpush3.bf16.msra.mxu1 %v3832_v15  ;;  %v3902_v15 = vld [vmem:[%s4396_s20 + $0xc0] ss:$28 sps:$4 sm:$0xff]  }
  0xd6   : > { %3479 = vmatprep.subr.bf16.mxu1 %v3847_v22 }
  0xd7   : > { %1585 = vmatmul.mubr.bf16.gmra.mrb[24].mxu0 %v3798_v11  ;;  %1714 = vmatmul.mubr.bf16.gmra.mrb[24].mxu1 %v3799_v12  ;;  %v3897_v11 = vld [vmem:[%s4396_s20 + $0x50] ss:$28 sps:$4 sm:$0xff]  }
  0xd8   : > { %1592 = vmatprep.mubr.bf16.mxu0 %v3803_v13  ;;  %1721 = vmatprep.mubr.bf16.mxu1 %v3805_v14  ;;  %v3898_v12 = vld [vmem:[%s4396_s20 + $0x20c] ss:$28 sps:$4 sm:$0xff]  }
  0xd9   : > { %3480 = vmatpush3.bf16.msra.mxu1 %v3847_v22  ;;  %v3900_v13 = vld [vmem:[%s4396_s20 + $0x88] ss:$28 sps:$4 sm:$0xff]   ;;  %v3911_v22 = vld [vmem:[%s4396_s20 + $0x278] ss:$28 sps:$4 sm:$0xff]  }
  0xda   : > { %3481 = vmatprep.subr.bf16.mxu1 %v3860_v25  ;;  %v3901_v14 = vld [vmem:[%s4396_s20 + $0x208] ss:$28 sps:$4 sm:$0xff]  }
  0xdd   : > { %3482 = vmatpush3.bf16.msra.mxu1 %v3860_v25  ;;  %v3915_v25 = vld [vmem:[%s4396_s20 + $0x1d8] ss:$28 sps:$4 sm:$0xff]  }
  0xde   : > { %3483 = vmatprep.subr.bf16.mxu1 %v3873_v28 }
  0xdf   : > { %1593 = vmatmul.mubr.bf16.gmra.mrb[28].mxu0 %v3807_v18  ;;  %1722 = vmatmul.mubr.bf16.gmra.mrb[28].mxu1 %v3808_v19  ;;  %v3906_v18 = vld [vmem:[%s4396_s20 + $0x240] ss:$28 sps:$4 sm:$0xff]   ;;  %v3907_v19 = vld [vmem:[%s4396_s20 + $0x130] ss:$28 sps:$4 sm:$0xff]  }
  0xe0   : > { %1600 = vmatprep.mubr.bf16.mxu0 %v3811_v20  ;;  %1729 = vmatprep.mubr.bf16.mxu1 %v3813_v21  ;;  %v3908_v20 = vld [vmem:[%s4396_s20 + $0x27c] ss:$28 sps:$4 sm:$0xff]   ;;  %v3910_v21 = vld [vmem:[%s4396_s20 + $0x168] ss:$28 sps:$4 sm:$0xff]  }
  0xe1   : > { %3484 = vmatpush3.bf16.msra.mxu1 %v3873_v28  ;;  %v3918_v28 = vld [vmem:[%s4396_s20 + $0x2ec] ss:$28 sps:$4 sm:$0xff]  }
  0xe2   : > { %3485 = vmatprep.subr.bf16.mxu1 %v3886_v33 }
  0xe5   : > { %3486 = vmatpush3.bf16.msra.mxu1 %v3886_v33  ;;  %v3923_v33 = vld [vmem:[%s4396_s20 + $0x324] ss:$28 sps:$4 sm:$0xff]  }
  0xe7   : > { %1601 = vmatmul.mubr.bf16.gmra.mrb[32].mxu0 %v3815_v23  ;;  %1730 = vmatmul.mubr.bf16.gmra.mrb[32].mxu1 %v3816_v24  ;;  %v3912_v23 = vld [vmem:[%s4396_s20 + $0x1a0] ss:$28 sps:$4 sm:$0xff]   ;;  %v3913_v24 = vld [vmem:[%s4396_s20 + $0x2b4] ss:$28 sps:$4 sm:$0xff]  }
  0xe8   : > { %1608 = vmatprep.mubr.bf16.mxu0 %v3818_v26  ;;  %1737 = vmatprep.mubr.bf16.mxu1 %v3820_v27  ;;  %v3916_v26 = vld [vmem:[%s4396_s20 + $0x2b0] ss:$28 sps:$4 sm:$0xff]  }
  0xe9   : > { %v3917_v27 = vld [vmem:[%s4396_s20 + $0x210] ss:$28 sps:$4 sm:$0xff]  }
  0xef   : > { %1609 = vmatmul.mubr.bf16.gmra.mrb[36].mxu0 %v3822_v29  ;;  %1738 = vmatmul.mubr.bf16.gmra.mrb[36].mxu1 %v3823_v30  ;;  %v3920_v29 = vld [vmem:[%s4396_s20 + $0x248] ss:$28 sps:$4 sm:$0xff]  }
  0xf0   : > { %1616 = vmatprep.mubr.bf16.mxu0 %v3826_v31  ;;  %1745 = vmatprep.mubr.bf16.mxu1 %v3828_v32  ;;  %v3933_v30 = vld [vmem:[#allocation7] sm:$0xff]  }
  0xf1   : > { %3519 = vmatprep.subr.bf16.mxu1 %v3933_v30  ;;  %v3921_v31 = vld [vmem:[%s4396_s20 + $0x2e8] ss:$28 sps:$4 sm:$0xff]   ;;  %v3922_v32 = vld [vmem:[%s4396_s20 + $0x280] ss:$28 sps:$4 sm:$0xff]  }
  0xf7   : > { %1617 = vmatmul.mubr.bf16.gmra.mrb[40].mxu0 %v3830_v34  ;;  %1746 = vmatmul.mubr.bf16.gmra.mrb[40].mxu1 %v3831_v35  ;;  %v3925_v34 = vld [vmem:[%s4396_s20 + $0x2b8] ss:$28 sps:$4 sm:$0xff]   ;;  %v3934_v35 = vld [vmem:[#allocation7 + $0x8] sm:$0xff]  }
  0xf8   : > { %1624 = vmatprep.mubr.bf16.mxu0 %v3835_v36  ;;  %1753 = vmatprep.mubr.bf16.mxu1 %v3837_v37  ;;  %v3926_v36 = vld [vmem:[%s4396_s20 + $0x320] ss:$28 sps:$4 sm:$0xff]   ;;  %v3927_v37 = vld [vmem:[%s4396_s20 + $0x2f0] ss:$28 sps:$4 sm:$0xff]  }
  0xff   : > { %1625 = vmatmul.mubr.bf16.gmra.mrb[44].mxu0 %v3839_v38  ;;  %1754 = vmatmul.mubr.bf16.gmra.mrb[44].mxu1 %v3840_v39  ;;  %v3928_v38 = vld [vmem:[%s4396_s20 + $0x35c] ss:$28 sps:$4 sm:$0xff]   ;;  %v3930_v39 = vld [vmem:[%s4396_s20 + $0x328] ss:$28 sps:$4 sm:$0xff]  }
 0x100   : > { %1761 = vmatprep.mubr.bf16.mxu1 %v3841_v40  ;;  %1858 = vmatprep.mubr.bf16.mxu0 %v3845_v41  ;;  %v3935_v40 = vld [vmem:[#allocation7 + $0x10] sm:$0xff]  }
 0x107   : > { %1762 = vmatmul.mubr.bf16.gmra.mrb[48].mxu1 %v3846_v43  ;;  %1859 = vmatmul.mubr.bf16.vlgmr.msra.gmra.mrb[48].mxu0 %v3843_v42 }
 0x108   : > { %1769 = vmatprep.mubr.bf16.mxu1 %v3848_v44  ;;  %1866 = vmatprep.mubr.bf16.mxu0 %v3850_v45  ;;  %v3931_v45 = vld [vmem:[%s4396_s20 + $0x358] ss:$28 sps:$4 sm:$0xff]  }
 0x10f   : > { %1770 = vmatmul.mubr.bf16.gmra.mrb[52].mxu1 %v3852_v46  ;;  %1867 = vmatmul.mubr.bf16.gmra.mrb[52].mxu0 %v3853_v47  ;;  %v3932_v46 = vld [vmem:[%s4396_s20 + $0x360] ss:$28 sps:$4 sm:$0xff]   ;;  %s4063_s20 = scalar_lea.vmem %s4908_s8, 4096 }
 0x110   : > { %1777 = vmatprep.mubr.bf16.mxu1 %v3854_v48  ;;  %1874 = vmatprep.mubr.bf16.mxu0 %v3856_v49  ;;  %p4064_p10 = scmp.ne.s32.totalorder %s4908_s8, %s4063_s20  ;;  %p4071_p1 = scmp.lt.s32.totalorder %s4069_s23, %s4063_s20 }
 0x112   : > { %p4065_p3 = pnand %p4064_p10, %p4344_p5  ;;  %p4072_p2 = por %p4071_p1, %p4070_p12 }
 0x114   : > { %p4066_p7 = pneg %p4065_p3 }
 0x116   : > { %p4073_p4 = pnand %p4072_p2, %p4066_p7 }
 0x117   : > { %1778 = vmatmul.mubr.bf16.gmra.mrb[56].mxu1 %v3858_v50  ;;  %1875 = vmatmul.mubr.bf16.gmra.mrb[56].mxu0 %v3859_v51 }
 0x118   : > { %1785 = vmatprep.mubr.bf16.mxu1 %v3861_v52  ;;  %1882 = vmatprep.mubr.bf16.mxu0 %v3863_v53 }
 0x11f   : > { %1786 = vmatmul.mubr.bf16.gmra.mrb[60].mxu1 %v3865_v54  ;;  %1883 = vmatmul.mubr.bf16.gmra.mrb[60].mxu0 %v3866_v55  ;;  %v3936_v55 = vld [vmem:[#allocation7 + $0x18] sm:$0xff]  }
 0x120   : > { %1793 = vmatprep.mubr.bf16.mxu1 %v3867_v56  ;;  %1890 = vmatprep.mubr.bf16.mxu0 %v3869_v57 }
 0x127   : > { %1794 = vmatmul.mubr.bf16.gmra.mrb[64].mxu1 %v3871_v58  ;;  %1891 = vmatmul.mubr.bf16.gmra.mrb[64].mxu0 %v3872_v59 }
 0x128   : > { %1801 = vmatprep.mubr.bf16.mxu1 %v3874_v60  ;;  %1898 = vmatprep.mubr.bf16.mxu0 %v3876_v61 }
 0x12f   : > { %1802 = vmatmul.mubr.bf16.gmra.mrb[68].mxu1 %v3878_v62  ;;  %1899 = vmatmul.mubr.bf16.gmra.mrb[68].mxu0 %v3879_v63 }
 0x130   : > { %1809 = vmatprep.mubr.bf16.mxu1 %v3880_v0  ;;  %1906 = vmatprep.mubr.bf16.mxu0 %v3882_v1 }
 0x137   : > { %1810 = vmatmul.mubr.bf16.gmra.mrb[72].mxu1 %v3884_v2  ;;  %1907 = vmatmul.mubr.bf16.gmra.mrb[72].mxu0 %v3885_v3 }
 0x138   : > { %1817 = vmatprep.mubr.bf16.mxu1 %v3887_v4  ;;  %1914 = vmatprep.mubr.bf16.mxu0 %v3889_v5  ;;  %v3937_v4 = vld [vmem:[#allocation7 + $0x20] sm:$0xff]  }
 0x13f   : > { %1818 = vmatmul.mubr.bf16.gmra.mrb[76].mxu1 %v3891_v6  ;;  %1915 = vmatmul.mubr.bf16.gmra.mrb[76].mxu0 %v3892_v7 }
 0x140   : > { %1922 = vmatprep.mubr.bf16.mxu0 %v3893_v8  ;;  %3487 = vmatprep.mubr.bf16.mxu1 %v3895_v9 }
 0x147   : > { %1923 = vmatmul.mubr.bf16.gmra.mrb[80].mxu0 %v3896_v10  ;;  %3488 = vmatmul.mubr.bf16.vlgmr.msra.gmra.mrb[80].mxu1 %v3897_v11 }
 0x148   : > { %1930 = vmatprep.mubr.bf16.mxu0 %v3898_v12  ;;  %3491 = vmatprep.mubr.bf16.mxu1 %v3900_v13 }
 0x149   : > { %3520 = vmatpush3.bf16.msra.mxu1 %v3933_v30  ;;  %v3939_v30 = vld [vmem:[#allocation7 + $0x30] sm:$0xff]  }
 0x14a   : > { %3521 = vmatprep.subr.bf16.mxu1 %v3934_v35 }
 0x14d   : > { %3522 = vmatpush3.bf16.msra.mxu1 %v3934_v35 }
 0x14e   : > { %3523 = vmatprep.subr.bf16.mxu1 %v3935_v40 }
 0x14f   : > { %1931 = vmatmul.mubr.bf16.gmra.mrb[84].mxu0 %v3901_v14  ;;  %3492 = vmatmul.mubr.bf16.gmra.mrb[84].mxu1 %v3902_v15 }
 0x150   : > { %1938 = vmatprep.mubr.bf16.mxu0 %v3903_v16  ;;  %3495 = vmatprep.mubr.bf16.mxu1 %v3905_v17  ;;  %v3938_v17 = vld [vmem:[#allocation7 + $0x28] sm:$0xff]  }
 0x151   : > { %3524 = vmatpush3.bf16.msra.mxu1 %v3935_v40 }
 0x152   : > { %3525 = vmatprep.subr.bf16.mxu1 %v3936_v55 }
 0x155   : > { %3526 = vmatpush3.bf16.msra.mxu1 %v3936_v55 }
 0x156   : > { %3527 = vmatprep.subr.bf16.mxu1 %v3937_v4 }
 0x157   : > { %1939 = vmatmul.mubr.bf16.gmra.mrb[88].mxu0 %v3906_v18  ;;  %3496 = vmatmul.mubr.bf16.gmra.mrb[88].mxu1 %v3907_v19 }
 0x158   : > { %1946 = vmatprep.mubr.bf16.mxu0 %v3908_v20  ;;  %3499 = vmatprep.mubr.bf16.mxu1 %v3910_v21 }
 0x159   : > { %3528 = vmatpush3.bf16.msra.mxu1 %v3937_v4 }
 0x15a   : > { %3529 = vmatprep.subr.bf16.mxu1 %v3938_v17 }
 0x15d   : > { %3530 = vmatpush3.bf16.msra.mxu1 %v3938_v17 }
 0x15e   : > { %3531 = vmatprep.subr.bf16.mxu1 %v3939_v30 }
 0x15f   : > { %1947 = vmatmul.mubr.bf16.gmra.mrb[92].mxu0 %v3911_v22  ;;  %3500 = vmatmul.mubr.bf16.gmra.mrb[92].mxu1 %v3912_v23 }
 0x160   : > { %1954 = vmatprep.mubr.bf16.mxu0 %v3913_v24  ;;  %3503 = vmatprep.mubr.bf16.mxu1 %v3915_v25 }
 0x161   : > { %3532 = vmatpush3.bf16.msra.mxu1 %v3939_v30 }
 0x167   : > { %1955 = vmatmul.mubr.bf16.gmra.mrb[96].mxu0 %v3916_v26  ;;  %3504 = vmatmul.mubr.bf16.gmra.mrb[96].mxu1 %v3917_v27 }
 0x168   : > { %1962 = vmatprep.mubr.bf16.mxu0 %v3918_v28  ;;  %3507 = vmatprep.mubr.bf16.mxu1 %v3920_v29 }
 0x16f   : > { %1963 = vmatmul.mubr.bf16.gmra.mrb[100].mxu0 %v3921_v31  ;;  %3508 = vmatmul.mubr.bf16.gmra.mrb[100].mxu1 %v3922_v32  ;;  %v4557_v31 = vld [vmem:[%s4958_s2] ss:$0 sm:$0xff] }
 0x170   : > { %1970 = vmatprep.mubr.bf16.mxu0 %v3923_v33  ;;  %3511 = vmatprep.mubr.bf16.mxu1 %v3925_v34 }
 0x177   : > { %1971 = vmatmul.mubr.bf16.gmra.mrb[104].mxu0 %v3926_v36  ;;  %3512 = vmatmul.mubr.bf16.gmra.mrb[104].mxu1 %v3927_v37 }
 0x178   : > { %1978 = vmatprep.mubr.bf16.mxu0 %v3928_v38  ;;  %3515 = vmatprep.mubr.bf16.mxu1 %v3930_v39 }
 0x17a   : > { %v3079_v41 = vpop.f32.mrb[0].mxu0  ;;  %v3151_v42 = vpop.f32.mrb[0].mxu1 }
 0x17b   : > { %v3080_v43 = vpop.f32.mrb[1].mxu0  ;;  %v3152_v44 = vpop.f32.mrb[1].mxu1 }
 0x17c   : > { %v4522_v47 = vadd.f32 %v3080_v43, %v3079_v41  ;;  %v3082_v48 = vpop.f32.mrb[2].mxu0  ;;  %v4524_v49 = vadd.f32 %v3152_v44, %v3151_v42  ;;  %v3154_v50 = vpop.f32.mrb[2].mxu1 }
 0x17d   : > { %v3083_v51 = vpop.f32.mrb[3].mxu0  ;;  %v3155_v52 = vpop.f32.mrb[3].mxu1 }
 0x17e   : > { %v4526_v53 = vadd.f32 %v3083_v51, %v3082_v48  ;;  %v4528_v54 = vadd.f32 %v3155_v52, %v3154_v50  ;;  %v1539_v36 = vadd.f32 %v4522_v47, %v4557_v31  ;;  %v3940_v48 = vld [vmem:[#allocation7 + $0x38] sm:$0xff]  }
 0x17f   : > { %1979 = vmatmul.mubr.bf16.gmra.mrb[108].mxu0 %v3931_v45  ;;  %3516 = vmatmul.mubr.bf16.gmra.mrb[108].mxu1 %v3932_v46 }
 0x180   : > { %v1542_v43 = vadd.f32 %v4526_v53, %v4557_v31  ;;  %3533 = vmatprep.subr.bf16.mxu1 %v3940_v48 }
 0x181   : > { %3534 = vmatpush3.bf16.msra.mxu1 %v3940_v48 }
 0x182   : > { %v3085_v56 = vpop.f32.mrb[4].mxu0  ;;  %v3157_v57 = vpop.f32.mrb[4].mxu1 }
 0x183   : > { %v3086_v58 = vpop.f32.mrb[5].mxu0  ;;  %v3158_v59 = vpop.f32.mrb[5].mxu1 }
 0x184   : > { %v4530_v60 = vadd.f32 %v3086_v58, %v3085_v56  ;;  %v3088_v61 = vpop.f32.mrb[6].mxu0  ;;  %v4532_v62 = vadd.f32 %v3158_v59, %v3157_v57  ;;  %v3160_v63 = vpop.f32.mrb[6].mxu1 }
 0x185   : > { %v3089_v0 = vpop.f32.mrb[7].mxu0  ;;  %v3161_v1 = vpop.f32.mrb[7].mxu1 }
 0x186   : > { %v4534_v2 = vadd.f32 %v3089_v0, %v3088_v61  ;;  %v4536_v3 = vadd.f32 %v3161_v1, %v3160_v63  ;;  %v1547_v56 = vadd.f32 %v4530_v60, %v4557_v31 }
 0x188   : > { %v1550_v0 = vadd.f32 %v4534_v2, %v4557_v31 }
 0x18a   : > { %v3091_v5 = vpop.f32.mrb[8].mxu0  ;;  %v3163_v6 = vpop.f32.mrb[8].mxu1 }
 0x18b   : > { %v3092_v7 = vpop.f32.mrb[9].mxu0  ;;  %v3164_v8 = vpop.f32.mrb[9].mxu1 }
 0x18c   : > { %v4538_v9 = vadd.f32 %v3092_v7, %v3091_v5  ;;  %v3094_v10 = vpop.f32.mrb[10].mxu0  ;;  %v4540_v11 = vadd.f32 %v3164_v8, %v3163_v6  ;;  %v3166_v12 = vpop.f32.mrb[10].mxu1 }
 0x18d   : > { %v3095_v13 = vpop.f32.mrb[11].mxu0  ;;  %v3167_v14 = vpop.f32.mrb[11].mxu1 }
 0x18e   : > { %v4542_v15 = vadd.f32 %v3095_v13, %v3094_v10  ;;  %v4544_v16 = vadd.f32 %v3167_v14, %v3166_v12  ;;  %v1555_v12 = vadd.f32 %v4538_v9, %v4557_v31 }
 0x192   : > { %v3097_v18 = vpop.f32.mrb[12].mxu0  ;;  %v3169_v19 = vpop.f32.mrb[12].mxu1 }
 0x193   : > { %v3098_v20 = vpop.f32.mrb[13].mxu0  ;;  %v3170_v21 = vpop.f32.mrb[13].mxu1 }
 0x194   : > { %v4546_v22 = vadd.f32 %v3098_v20, %v3097_v18  ;;  %v3100_v23 = vpop.f32.mrb[14].mxu0  ;;  %v4548_v24 = vadd.f32 %v3170_v21, %v3169_v19  ;;  %v3172_v25 = vpop.f32.mrb[14].mxu1  ;;  %v1558_v20 = vadd.f32 %v4542_v15, %v4557_v31 }
 0x195   : > { %v3101_v26 = vpop.f32.mrb[15].mxu0  ;;  %v3173_v27 = vpop.f32.mrb[15].mxu1 }
 0x196   : > { %v4550_v28 = vadd.f32 %v3101_v26, %v3100_v23  ;;  %v4552_v29 = vadd.f32 %v3173_v27, %v3172_v25 }
 0x19a   : > { %v3103_v32 = vpop.f32.mrb[16].mxu0  ;;  %v3191_v33 = vpop.f32.mrb[16].mxu1 }
 0x19b   : > { %v3104_v34 = vpop.f32.mrb[17].mxu0  ;;  %v3192_v35 = vpop.f32.mrb[17].mxu1 }
 0x19c   : > { %v4561_v37 = vadd.f32 %v3104_v34, %v3103_v32  ;;  %v3193_v38 = vadd.f32 %v3192_v35, %v3191_v33  ;;  %v3106_v39 = vpop.f32.mrb[18].mxu0  ;;  %v3194_v40 = vpop.f32.mrb[18].mxu1  ;;  %v1563_v33 = vadd.f32 %v4546_v22, %v4557_v31 }
 0x19d   : > { %v3107_v41 = vpop.f32.mrb[19].mxu0  ;;  %v3195_v42 = vpop.f32.mrb[19].mxu1 }
 0x19e   : > { %v4565_v44 = vadd.f32 %v3193_v38, %v1539_v36  ;;  %v4567_v45 = vadd.f32 %v3107_v41, %v3106_v39  ;;  %v3196_v46 = vadd.f32 %v3195_v42, %v3194_v40  ;;  %v1566_v40 = vadd.f32 %v4550_v28, %v4557_v31 }
 0x1a0   : > { %v4569_v50 = vadd.f32 %v3196_v46, %v1542_v43 }
 0x1a2   : > { %v3109_v47 = vpop.f32.mrb[20].mxu0  ;;  %v3197_v51 = vpop.f32.mrb[20].mxu1 }
 0x1a3   : > { %v3110_v52 = vpop.f32.mrb[21].mxu0  ;;  %v3198_v55 = vpop.f32.mrb[21].mxu1 }
 0x1a4   : > { %v4573_v57 = vadd.f32 %v3110_v52, %v3109_v47  ;;  %v3199_v53 = vadd.f32 %v3198_v55, %v3197_v51  ;;  %v3112_v58 = vpop.f32.mrb[22].mxu0  ;;  %v3200_v59 = vpop.f32.mrb[22].mxu1  ;;  %v1571_v52 = vadd.f32 %v4561_v37, %v4557_v31 }
 0x1a5   : > { %v3113_v61 = vpop.f32.mrb[23].mxu0  ;;  %v3201_v63 = vpop.f32.mrb[23].mxu1 }
 0x1a6   : > { %v4577_v1 = vadd.f32 %v3199_v53, %v1547_v56  ;;  %v3114_v4 = vadd.f32 %v3113_v61, %v3112_v58  ;;  %v3202_v5 = vadd.f32 %v3201_v63, %v3200_v59  ;;  %v1574_v61 = vadd.f32 %v4567_v45, %v4557_v31 }
 0x1a8   : > { %v4579_v6 = vadd.f32 %v3202_v5, %v1550_v0 }
 0x1aa   : > { %v3115_v7 = vpop.f32.mrb[24].mxu0  ;;  %v3203_v8 = vpop.f32.mrb[24].mxu1 }
 0x1ab   : > { %v3116_v10 = vpop.f32.mrb[25].mxu0  ;;  %v3204_v60 = vpop.f32.mrb[25].mxu1 }
 0x1ac   : > { %v4583_v13 = vadd.f32 %v3116_v10, %v3115_v7  ;;  %v3205_v14 = vadd.f32 %v3204_v60, %v3203_v8  ;;  %v3118_v17 = vpop.f32.mrb[26].mxu0  ;;  %v3206_v18 = vpop.f32.mrb[26].mxu1 }
 0x1ad   : > { %v3119_v19 = vpop.f32.mrb[27].mxu0  ;;  %v3207_v2 = vpop.f32.mrb[27].mxu1 }
 0x1ae   : > { %v4587_v21 = vadd.f32 %v3205_v14, %v1555_v12  ;;  %v3120_v23 = vadd.f32 %v3119_v19, %v3118_v17  ;;  %v3208_v25 = vadd.f32 %v3207_v2, %v3206_v18  ;;  %v1579_v12 = vadd.f32 %v4573_v57, %v4557_v31 }
 0x1b0   : > { %v4589_v26 = vadd.f32 %v3208_v25, %v1558_v20  ;;  %v1582_v20 = vadd.f32 %v3114_v4, %v4557_v31 }
 0x1b2   : > { %v3121_v27 = vpop.f32.mrb[28].mxu0  ;;  %v3209_v30 = vpop.f32.mrb[28].mxu1 }
 0x1b3   : > { %v3122_v32 = vpop.f32.mrb[29].mxu0  ;;  %v3210_v9 = vpop.f32.mrb[29].mxu1 }
 0x1b4   : > { %v4593_v34 = vadd.f32 %v3122_v32, %v3121_v27  ;;  %v3211_v35 = vadd.f32 %v3210_v9, %v3209_v30  ;;  %v3124_v36 = vpop.f32.mrb[30].mxu0  ;;  %v3212_v38 = vpop.f32.mrb[30].mxu1 }
 0x1b5   : > { %v3125_v39 = vpop.f32.mrb[31].mxu0  ;;  %v3213_v15 = vpop.f32.mrb[31].mxu1 }
 0x1b6   : > { %v4597_v41 = vadd.f32 %v3211_v35, %v1563_v33  ;;  %v3126_v42 = vadd.f32 %v3125_v39, %v3124_v36  ;;  %v3214_v43 = vadd.f32 %v3213_v15, %v3212_v38  ;;  %v1587_v36 = vadd.f32 %v4583_v13, %v4557_v31 }
 0x1b8   : > { %v4599_v46 = vadd.f32 %v3214_v43, %v1566_v40 }
 0x1ba   : > { %v3127_v48 = vpop.f32.mrb[32].mxu0  ;;  %v3215_v47 = vpop.f32.mrb[32].mxu1 }
 0x1bb   : > { %v3128_v51 = vpop.f32.mrb[33].mxu0  ;;  %v3216_v22 = vpop.f32.mrb[33].mxu1 }
 0x1bc   : > { %v4603_v55 = vadd.f32 %v3128_v51, %v3127_v48  ;;  %v3217_v56 = vadd.f32 %v3216_v22, %v3215_v47  ;;  %v3130_v53 = vpop.f32.mrb[34].mxu0  ;;  %v3218_v58 = vpop.f32.mrb[34].mxu1  ;;  %v1590_v48 = vadd.f32 %v3120_v23, %v4557_v31 }
 0x1bd   : > { %v3131_v59 = vpop.f32.mrb[35].mxu0  ;;  %v3219_v28 = vpop.f32.mrb[35].mxu1 }
 0x1be   : > { %v4607_v63 = vadd.f32 %v3217_v56, %v1571_v52  ;;  %v3132_v0 = vadd.f32 %v3131_v59, %v3130_v53  ;;  %v3220_v5 = vadd.f32 %v3219_v28, %v3218_v58  ;;  %v1595_v59 = vadd.f32 %v4593_v34, %v4557_v31 }
 0x1c0   : > { %v4609_v7 = vadd.f32 %v3220_v5, %v1574_v61 }
 0x1c2   : > { %v3133_v8 = vpop.f32.mrb[36].mxu0  ;;  %v3221_v10 = vpop.f32.mrb[36].mxu1 }
 0x1c3   : > { %v3134_v60 = vpop.f32.mrb[37].mxu0  ;;  %v3222_v37 = vpop.f32.mrb[37].mxu1 }
 0x1c4   : > { %v4613_v14 = vadd.f32 %v3134_v60, %v3133_v8  ;;  %v3223_v17 = vadd.f32 %v3222_v37, %v3221_v10  ;;  %v3136_v18 = vpop.f32.mrb[38].mxu0  ;;  %v3224_v19 = vpop.f32.mrb[38].mxu1  ;;  %v1598_v60 = vadd.f32 %v3126_v42, %v4557_v31  ;;  %v1606_v42 = vadd.f32 %v3132_v0, %v4557_v31 }
 0x1c5   : > { %v3137_v2 = vpop.f32.mrb[39].mxu0  ;;  %v3225_v45 = vpop.f32.mrb[39].mxu1 }
 0x1c6   : > { %v4616_v25 = vadd.f32 %v3223_v17, %v1579_v12  ;;  %v4618_v27 = vadd.f32 %v3137_v2, %v3136_v18  ;;  %v3226_v30 = vadd.f32 %v3225_v45, %v3224_v19 }
 0x1c8   : > { %v4620_v32 = vadd.f32 %v3226_v30, %v1582_v20  ;;  %v1603_v20 = vadd.f32 %v4603_v55, %v4557_v31  ;;  %v3941_v55 = vld [vmem:[#allocation8] sm:$0xff]  }
 0x1c9   : > { %3567 = vmatprep.subr.bf16.mxu0 %v3941_v55 }
 0x1ca   : > { %v3139_v9 = vpop.f32.mrb[40].mxu0  ;;  %v3227_v33 = vpop.f32.mrb[40].mxu1  ;;  %3568 = vmatpush3.bf16.msra.mxu0 %v3941_v55 }
 0x1cb   : > { %v3140_v35 = vpop.f32.mrb[41].mxu0  ;;  %v3228_v57 = vpop.f32.mrb[41].mxu1 }
 0x1cc   : > { %v4624_v38 = vadd.f32 %v3140_v35, %v3139_v9  ;;  %v3229_v39 = vadd.f32 %v3228_v57, %v3227_v33  ;;  %v3142_v15 = vpop.f32.mrb[42].mxu0  ;;  %v3230_v40 = vpop.f32.mrb[42].mxu1 }
 0x1cd   : > { %v3143_v4 = vpop.f32.mrb[43].mxu0  ;;  %v3231_v43 = vpop.f32.mrb[43].mxu1 }
 0x1ce   : > { %v4627_v47 = vadd.f32 %v3229_v39, %v1587_v36  ;;  %v4629_v51 = vadd.f32 %v3143_v4, %v3142_v15  ;;  %v3232_v22 = vadd.f32 %v3231_v43, %v3230_v40 }
 0x1d0   : > { %v4631_v52 = vadd.f32 %v3232_v22, %v1590_v48  ;;  %v3942_v22 = vld [vmem:[#allocation8 + $0x8] sm:$0xff]  }
 0x1d1   : > { %3569 = vmatprep.subr.bf16.mxu0 %v3942_v22 }
 0x1d2   : > { %v3145_v56 = vpop.f32.mrb[44].mxu0  ;;  %v3233_v53 = vpop.f32.mrb[44].mxu1  ;;  %3570 = vmatpush3.bf16.msra.mxu0 %v3942_v22 }
 0x1d3   : > { %v3146_v58 = vpop.f32.mrb[45].mxu0  ;;  %v3234_v13 = vpop.f32.mrb[45].mxu1 }
 0x1d4   : > { %v4635_v28 = vadd.f32 %v3146_v58, %v3145_v56  ;;  %v3235_v61 = vadd.f32 %v3234_v13, %v3233_v53  ;;  %v3148_v5 = vpop.f32.mrb[46].mxu0  ;;  %v3236_v8 = vpop.f32.mrb[46].mxu1  ;;  %v1611_v13 = vadd.f32 %v4613_v14, %v4557_v31 }
 0x1d5   : > { %v3149_v23 = vpop.f32.mrb[47].mxu0  ;;  %v3237_v10 = vpop.f32.mrb[47].mxu1 }
 0x1d6   : > { %v4638_v37 = vadd.f32 %v3235_v61, %v1595_v59  ;;  %v4640_v12 = vadd.f32 %v3149_v23, %v3148_v5  ;;  %v3238_v17 = vadd.f32 %v3237_v10, %v3236_v8  ;;  %v3943_v8 = vld [vmem:[#allocation8 + $0x10] sm:$0xff]  }
 0x1d7   : > { %3571 = vmatprep.subr.bf16.mxu0 %v3943_v8 }
 0x1d8   : > { %v4642_v18 = vadd.f32 %v3238_v17, %v1598_v60  ;;  %3572 = vmatpush3.bf16.msra.mxu0 %v3943_v8 }
 0x1da   : > { %v3239_v19 = vpop.f32.mrb[48].mxu1  ;;  %v3303_v2 = vpop.f32.mrb[48].mxu0 }
 0x1db   : > { %v3240_v45 = vpop.f32.mrb[49].mxu1  ;;  %v3304_v34 = vpop.f32.mrb[49].mxu0 }
 0x1dc   : > { %v3241_v30 = vadd.f32 %v3240_v45, %v3239_v19  ;;  %v3305_v9 = vadd.f32 %v3304_v34, %v3303_v2  ;;  %v3242_v33 = vpop.f32.mrb[50].mxu1  ;;  %v3306_v35 = vpop.f32.mrb[50].mxu0  ;;  %v3944_v34 = vld [vmem:[#allocation8 + $0x18] sm:$0xff]  }
 0x1dd   : > { %v3243_v57 = vpop.f32.mrb[51].mxu1  ;;  %v3307_v36 = vpop.f32.mrb[51].mxu0  ;;  %3573 = vmatprep.subr.bf16.mxu0 %v3944_v34 }
 0x1de   : > { %v4647_v39 = vadd.f32 %v3241_v30, %v1603_v20  ;;  %v3244_v15 = vadd.f32 %v3243_v57, %v3242_v33  ;;  %v3308_v40 = vadd.f32 %v3307_v36, %v3306_v35  ;;  %v4650_v4 = vadd.f32 %v3305_v9, %v4565_v44  ;;  %v3945_v36 = vld [vmem:[#allocation8 + $0x20] sm:$0xff]   ;;  %3574 = vmatpush3.bf16.msra.mxu0 %v3944_v34 }
 0x1df   : > { %v1619_v33 = vadd.f32 %v4624_v38, %v4557_v31  ;;  %3575 = vmatprep.subr.bf16.mxu0 %v3945_v36 }
 0x1e0   : > { %v4652_v43 = vadd.f32 %v3244_v15, %v1606_v42  ;;  %v4655_v48 = vadd.f32 %v3308_v40, %v4569_v50  ;;  %v1614_v50 = vadd.f32 %v4618_v27, %v4557_v31 }
 0x1e2   : > { %v3245_v56 = vpop.f32.mrb[52].mxu1  ;;  %v3309_v53 = vpop.f32.mrb[52].mxu0  ;;  %3576 = vmatpush3.bf16.msra.mxu0 %v3945_v36 }
 0x1e3   : > { %v3246_v0 = vpop.f32.mrb[53].mxu1  ;;  %v3310_v58 = vpop.f32.mrb[53].mxu0 }
 0x1e4   : > { %v3247_v59 = vadd.f32 %v3246_v0, %v3245_v56  ;;  %v3311_v61 = vadd.f32 %v3310_v58, %v3309_v53  ;;  %v3248_v44 = vpop.f32.mrb[54].mxu1  ;;  %v3312_v5 = vpop.f32.mrb[54].mxu0  ;;  %v3946_v58 = vld [vmem:[#allocation8 + $0x28] sm:$0xff]  }
 0x1e5   : > { %v3249_v23 = vpop.f32.mrb[55].mxu1  ;;  %v3313_v10 = vpop.f32.mrb[55].mxu0  ;;  %3577 = vmatprep.subr.bf16.mxu0 %v3946_v58 }
 0x1e6   : > { %v4661_v60 = vadd.f32 %v3247_v59, %v1611_v13  ;;  %v3250_v17 = vadd.f32 %v3249_v23, %v3248_v44  ;;  %v3314_v19 = vadd.f32 %v3313_v10, %v3312_v5  ;;  %v4664_v2 = vadd.f32 %v3311_v61, %v4577_v1  ;;  %v3947_v23 = vld [vmem:[#allocation8 + $0x30] sm:$0xff]   ;;  %3578 = vmatpush3.bf16.msra.mxu0 %v3946_v58 }
 0x1e7   : > { %v1627_v44 = vadd.f32 %v4635_v28, %v4557_v31  ;;  %3579 = vmatprep.subr.bf16.mxu0 %v3947_v23 }
 0x1e8   : > { %v4666_v14 = vadd.f32 %v3250_v17, %v1614_v50  ;;  %v4669_v45 = vadd.f32 %v3314_v19, %v4579_v6  ;;  %v1622_v6 = vadd.f32 %v4629_v51, %v4557_v31 }
 0x1ea   : > { %v3251_v20 = vpop.f32.mrb[56].mxu1  ;;  %v3315_v30 = vpop.f32.mrb[56].mxu0  ;;  %3580 = vmatpush3.bf16.msra.mxu0 %v3947_v23 }
 0x1eb   : > { %v3252_v27 = vpop.f32.mrb[57].mxu1  ;;  %v3316_v9 = vpop.f32.mrb[57].mxu0 }
 0x1ec   : > { %v3253_v35 = vadd.f32 %v3252_v27, %v3251_v20  ;;  %v3317_v42 = vadd.f32 %v3316_v9, %v3315_v30  ;;  %v3254_v1 = vpop.f32.mrb[58].mxu1  ;;  %v3318_v57 = vpop.f32.mrb[58].mxu0  ;;  %v3948_v9 = vld [vmem:[#allocation8 + $0x38] sm:$0xff]  }
 0x1ed   : > { %v3255_v15 = vpop.f32.mrb[59].mxu1  ;;  %v3319_v40 = vpop.f32.mrb[59].mxu0  ;;  %3581 = vmatprep.subr.bf16.mxu0 %v3948_v9 }
 0x1ee   : > { %v4675_v55 = vadd.f32 %v3253_v35, %v1619_v33  ;;  %v3256_v22 = vadd.f32 %v3255_v15, %v3254_v1  ;;  %v3320_v56 = vadd.f32 %v3319_v40, %v3318_v57  ;;  %v4678_v53 = vadd.f32 %v3317_v42, %v4587_v21  ;;  %3582 = vmatpush3.bf16.msra.mxu0 %v3948_v9 }
 0x1ef   : > { %v1635_v1 = vadd.f32 %v4524_v49, %v4557_v31  ;;  %v1638_v15 = vadd.f32 %v4528_v54, %v4557_v31  ;;  %v1643_v54 = vadd.f32 %v4532_v62, %v4557_v31 }
 0x1f0   : > { %v4680_v38 = vadd.f32 %v3256_v22, %v1622_v6  ;;  %v4683_v0 = vadd.f32 %v3320_v56, %v4589_v26  ;;  %v1630_v26 = vadd.f32 %v4640_v12, %v4557_v31 }
 0x1f2   : > { %v3257_v13 = vpop.f32.mrb[60].mxu1  ;;  %v3321_v59 = vpop.f32.mrb[60].mxu0 }
 0x1f3   : > { %v3258_v51 = vpop.f32.mrb[61].mxu1  ;;  %v3322_v61 = vpop.f32.mrb[61].mxu0 }
 0x1f4   : > { %v3259_v5 = vadd.f32 %v3258_v51, %v3257_v13  ;;  %v3323_v8 = vadd.f32 %v3322_v61, %v3321_v59  ;;  %v3260_v21 = vpop.f32.mrb[62].mxu1  ;;  %v3324_v50 = vpop.f32.mrb[62].mxu0 }
 0x1f5   : > { %v3261_v10 = vpop.f32.mrb[63].mxu1  ;;  %v3325_v17 = vpop.f32.mrb[63].mxu0 }
 0x1f6   : > { %v4689_v19 = vadd.f32 %v3259_v5, %v1627_v44  ;;  %v3262_v34 = vadd.f32 %v3261_v10, %v3260_v21  ;;  %v3326_v20 = vadd.f32 %v3325_v17, %v3324_v50  ;;  %v4692_v30 = vadd.f32 %v3323_v8, %v4597_v41 }
 0x1f8   : > { %v4694_v28 = vadd.f32 %v3262_v34, %v1630_v26  ;;  %v4697_v27 = vadd.f32 %v3326_v20, %v4599_v46 }
 0x1fa   : > { %v3263_v33 = vpop.f32.mrb[64].mxu1  ;;  %v3327_v35 = vpop.f32.mrb[64].mxu0 }
 0x1fb   : > { %v3264_v12 = vpop.f32.mrb[65].mxu1  ;;  %v3328_v42 = vpop.f32.mrb[65].mxu0 }
 0x1fc   : > { %v3265_v57 = vadd.f32 %v3264_v12, %v3263_v33  ;;  %v3329_v36 = vadd.f32 %v3328_v42, %v3327_v35  ;;  %v3266_v41 = vpop.f32.mrb[66].mxu1  ;;  %v3330_v6 = vpop.f32.mrb[66].mxu0 }
 0x1fd   : > { %v3267_v46 = vpop.f32.mrb[67].mxu1  ;;  %v3331_v40 = vpop.f32.mrb[67].mxu0 }
 0x1fe   : > { %v4703_v22 = vadd.f32 %v3265_v57, %v1635_v1  ;;  %v3268_v56 = vadd.f32 %v3267_v46, %v3266_v41  ;;  %v3332_v58 = vadd.f32 %v3331_v40, %v3330_v6  ;;  %v4706_v13 = vadd.f32 %v3329_v36, %v4607_v63 }
 0x1ff   : > { %v1646_v63 = vadd.f32 %v4536_v3, %v4557_v31  ;;  %v1651_v3 = vadd.f32 %v4540_v11, %v4557_v31 }
 0x200   : > { %v4708_v59 = vadd.f32 %v3268_v56, %v1638_v15  ;;  %v4711_v49 = vadd.f32 %v3332_v58, %v4609_v7 }
 0x202   : > { %v3269_v51 = vpop.f32.mrb[68].mxu1  ;;  %v3333_v61 = vpop.f32.mrb[68].mxu0 }
 0x203   : > { %v3270_v44 = vpop.f32.mrb[69].mxu1  ;;  %v3334_v5 = vpop.f32.mrb[69].mxu0 }
 0x204   : > { %v3271_v8 = vadd.f32 %v3270_v44, %v3269_v51  ;;  %v3335_v21 = vadd.f32 %v3334_v5, %v3333_v61  ;;  %v3272_v50 = vpop.f32.mrb[70].mxu1  ;;  %v3336_v23 = vpop.f32.mrb[70].mxu0 }
 0x205   : > { %v3273_v26 = vpop.f32.mrb[71].mxu1  ;;  %v3337_v10 = vpop.f32.mrb[71].mxu0 }
 0x206   : > { %v4717_v17 = vadd.f32 %v3271_v8, %v1643_v54  ;;  %v3274_v7 = vadd.f32 %v3273_v26, %v3272_v50  ;;  %v3338_v34 = vadd.f32 %v3337_v10, %v3336_v23  ;;  %v4720_v20 = vadd.f32 %v3335_v21, %v4616_v25 }
 0x207   : > { %v1654_v25 = vadd.f32 %v4544_v16, %v4557_v31  ;;  %v1659_v16 = vadd.f32 %v4548_v24, %v4557_v31 }
 0x208   : > { %v4722_v9 = vadd.f32 %v3274_v7, %v1646_v63  ;;  %v4725_v62 = vadd.f32 %v3338_v34, %v4620_v32 }
 0x20a   : > { %v3275_v33 = vpop.f32.mrb[72].mxu1  ;;  %v3339_v35 = vpop.f32.mrb[72].mxu0 }
 0x20b   : > { %v3276_v12 = vpop.f32.mrb[73].mxu1  ;;  %v3340_v42 = vpop.f32.mrb[73].mxu0 }
 0x20c   : > { %v3277_v1 = vadd.f32 %v3276_v12, %v3275_v33  ;;  %v3341_v57 = vadd.f32 %v3340_v42, %v3339_v35  ;;  %v3278_v36 = vpop.f32.mrb[74].mxu1  ;;  %v3342_v41 = vpop.f32.mrb[74].mxu0 }
 0x20d   : > { %v3279_v6 = vpop.f32.mrb[75].mxu1  ;;  %v3343_v15 = vpop.f32.mrb[75].mxu0 }
 0x20e   : > { %v4731_v46 = vadd.f32 %v3277_v1, %v1651_v3  ;;  %v3280_v32 = vadd.f32 %v3279_v6, %v3278_v36  ;;  %v3344_v40 = vadd.f32 %v3343_v15, %v3342_v41  ;;  %v4734_v56 = vadd.f32 %v3341_v57, %v4627_v47 }
 0x20f   : > { %v1662_v47 = vadd.f32 %v4552_v29, %v4557_v31 }
 0x210   : > { %v4736_v58 = vadd.f32 %v3280_v32, %v1654_v25  ;;  %v4739_v11 = vadd.f32 %v3344_v40, %v4631_v52 }
 0x212   : > { %v3281_v51 = vpop.f32.mrb[76].mxu1  ;;  %v3345_v61 = vpop.f32.mrb[76].mxu0 }
 0x213   : > { %v3282_v44 = vpop.f32.mrb[77].mxu1  ;;  %v3346_v5 = vpop.f32.mrb[77].mxu0 }
 0x214   : > { %v3283_v54 = vadd.f32 %v3282_v44, %v3281_v51  ;;  %v3347_v8 = vadd.f32 %v3346_v5, %v3345_v61  ;;  %v3284_v21 = vpop.f32.mrb[78].mxu1  ;;  %v3348_v50 = vpop.f32.mrb[78].mxu0 }
 0x215   : > { %v3285_v23 = vpop.f32.mrb[79].mxu1  ;;  %v3349_v63 = vpop.f32.mrb[79].mxu0 }
 0x216   : > { %v4745_v26 = vadd.f32 %v3283_v54, %v1659_v16  ;;  %v3286_v52 = vadd.f32 %v3285_v23, %v3284_v21  ;;  %v3350_v10 = vadd.f32 %v3349_v63, %v3348_v50  ;;  %v4748_v7 = vadd.f32 %v3347_v8, %v4638_v37 }
 0x218   : > { %v4750_v34 = vadd.f32 %v3286_v52, %v1662_v47  ;;  %v4753_v24 = vadd.f32 %v3350_v10, %v4642_v18 }
 0x21a   : > { %v3351_v33 = vpop.f32.mrb[80].mxu0  ;;  %v3489_v35 = vpop.f32.mrb[80].mxu1 }
 0x21b   : > { %v2030_v12 = vadd.f32 %v3489_v35, %v4664_v2  ;;  %v3352_v42 = vpop.f32.mrb[81].mxu0  ;;  %v2021_v29 = vpop.f32.mrb[81].mxu1 }
 0x21c   : > { %v3353_v31 = vadd.f32 %v3352_v42, %v3351_v33  ;;  %v2022_v3 = vadd.f32 %v2021_v29, %v4650_v4  ;;  %v3354_v1 = vpop.f32.mrb[82].mxu0  ;;  %v3490_v57 = vpop.f32.mrb[82].mxu1 }
 0x21d   : > { %v2033_v36 = vadd.f32 %v3490_v57, %v4669_v45  ;;  %v3355_v37 = vpop.f32.mrb[83].mxu0  ;;  %v2024_v41 = vpop.f32.mrb[83].mxu1  ;;  %v2150_v15 = vmax.f32 %v2030_v12, 0.0 }
 0x21e   : > { %v3356_v25 = vadd.f32 %v3355_v37, %v3354_v1  ;;  %v2025_v6 = vadd.f32 %v2024_v41, %v4655_v48  ;;  %v4760_v18 = vadd.f32 %v3353_v31, %v4647_v39  ;;  %v2148_v2 = vmax.f32 %v2022_v3, 0.0 }
 0x21f   : > { %v2151_v32 = vmax.f32 %v2033_v36, 0.0 }
 0x220   : > { %v2149_v40 = vmax.f32 %v2025_v6, 0.0  ;;  %v4763_v51 = vadd.f32 %v3356_v25, %v4652_v43 }
 0x221   : > { %v2181_v4 = vpack.c.bf16 %v2151_v32, %v2150_v15 }
 0x222   : > { %v2180_v61 = vpack.c.bf16 %v2149_v40, %v2148_v2  ;;  %v3357_v44 = vpop.f32.mrb[84].mxu0  ;;  %v3493_v5 = vpop.f32.mrb[84].mxu1 }
 0x223   : > { %v2046_v45 = vadd.f32 %v3493_v5, %v4692_v30  ;;  %v3358_v16 = vpop.f32.mrb[85].mxu0  ;;  %v2037_v54 = vpop.f32.mrb[85].mxu1 }
 0x224   : > { %v3359_v8 = vadd.f32 %v3358_v16, %v3357_v44  ;;  %v2038_v48 = vadd.f32 %v2037_v54, %v4678_v53  ;;  %v3360_v39 = vpop.f32.mrb[86].mxu0  ;;  %v3494_v21 = vpop.f32.mrb[86].mxu1  ;;  %3535 = vmatprep.mubr.bf16.mxu1 %v2180_v61 }
 0x225   : > { %v2049_v50 = vadd.f32 %v3494_v21, %v4697_v27  ;;  %v3361_v47 = vpop.f32.mrb[87].mxu0  ;;  %v2040_v23 = vpop.f32.mrb[87].mxu1  ;;  %3536 = vmatmul.mubr.bf16.vlgmr.msra.gmra.mrb[112].mxu1 %v2181_v4  ;;  %v2154_v10 = vmax.f32 %v2046_v45, 0.0 }
 0x226   : > { %v3362_v43 = vadd.f32 %v3361_v47, %v3360_v39  ;;  %v2041_v63 = vadd.f32 %v2040_v23, %v4683_v0  ;;  %v1933_v52 = vadd.f32 %v3359_v8, %v4661_v60  ;;  %v2152_v33 = vmax.f32 %v2038_v48, 0.0 }
 0x227   : > { %v2155_v30 = vmax.f32 %v2049_v50, 0.0 }
 0x228   : > { %v2153_v35 = vmax.f32 %v2041_v63, 0.0  ;;  %v1936_v12 = vadd.f32 %v3362_v43, %v4666_v14 }
 0x229   : > { %v2183_v53 = vpack.c.bf16 %v2155_v30, %v2154_v10 }
 0x22a   : > { %v2182_v42 = vpack.c.bf16 %v2153_v35, %v2152_v33  ;;  %v3363_v29 = vpop.f32.mrb[88].mxu0  ;;  %v3497_v31 = vpop.f32.mrb[88].mxu1 }
 0x22b   : > { %v2062_v27 = vadd.f32 %v3497_v31, %v4720_v20  ;;  %v3364_v3 = vpop.f32.mrb[89].mxu0  ;;  %v2053_v1 = vpop.f32.mrb[89].mxu1 }
 0x22c   : > { %v3365_v57 = vadd.f32 %v3364_v3, %v3363_v29  ;;  %v2054_v36 = vadd.f32 %v2053_v1, %v4706_v13  ;;  %v3366_v0 = vpop.f32.mrb[90].mxu0  ;;  %v3498_v37 = vpop.f32.mrb[90].mxu1  ;;  %3539 = vmatprep.mubr.bf16.mxu1 %v2182_v42 }
 0x22d   : > { %v2065_v60 = vadd.f32 %v3498_v37, %v4725_v62  ;;  %v3367_v41 = vpop.f32.mrb[91].mxu0  ;;  %v2056_v25 = vpop.f32.mrb[91].mxu1  ;;  %3540 = vmatmul.mubr.bf16.gmra.mrb[116].mxu1 %v2183_v53  ;;  %v2158_v32 = vmax.f32 %v2062_v27, 0.0 }
 0x22e   : > { %v3368_v14 = vadd.f32 %v3367_v41, %v3366_v0  ;;  %v2057_v6 = vadd.f32 %v2056_v25, %v4711_v49  ;;  %v1941_v15 = vadd.f32 %v3365_v57, %v4675_v55  ;;  %v2156_v2 = vmax.f32 %v2054_v36, 0.0 }
 0x22f   : > { %v2159_v20 = vmax.f32 %v2065_v60, 0.0 }
 0x230   : > { %v2157_v40 = vmax.f32 %v2057_v6, 0.0  ;;  %v4777_v4 = vadd.f32 %v3368_v14, %v4680_v38 }
 0x231   : > { %v2185_v13 = vpack.c.bf16 %v2159_v20, %v2158_v32 }
 0x232   : > { %v2184_v61 = vpack.c.bf16 %v2157_v40, %v2156_v2  ;;  %v3369_v44 = vpop.f32.mrb[92].mxu0  ;;  %v3501_v5 = vpop.f32.mrb[92].mxu1 }
 0x233   : > { %v2078_v62 = vadd.f32 %v3501_v5, %v4748_v7  ;;  %v3370_v45 = vpop.f32.mrb[93].mxu0  ;;  %v2069_v16 = vpop.f32.mrb[93].mxu1 }
 0x234   : > { %v3371_v54 = vadd.f32 %v3370_v45, %v3369_v44  ;;  %v2070_v49 = vadd.f32 %v2069_v16, %v4734_v56  ;;  %v3372_v8 = vpop.f32.mrb[94].mxu0  ;;  %v3502_v55 = vpop.f32.mrb[94].mxu1  ;;  %3543 = vmatprep.mubr.bf16.mxu1 %v2184_v61 }
 0x235   : > { %v2081_v48 = vadd.f32 %v3502_v55, %v4753_v24  ;;  %v3373_v39 = vpop.f32.mrb[95].mxu0  ;;  %v2072_v21 = vpop.f32.mrb[95].mxu1  ;;  %3544 = vmatmul.mubr.bf16.gmra.mrb[120].mxu1 %v2185_v13  ;;  %v2162_v23 = vmax.f32 %v2078_v62, 0.0 }
 0x236   : > { %v3374_v38 = vadd.f32 %v3373_v39, %v3372_v8  ;;  %v2073_v50 = vadd.f32 %v2072_v21, %v4739_v11  ;;  %v1949_v47 = vadd.f32 %v3371_v54, %v4689_v19  ;;  %v2160_v43 = vmax.f32 %v2070_v49, 0.0 }
 0x237   : > { %v2163_v7 = vmax.f32 %v2081_v48, 0.0 }
 0x238   : > { %v2161_v63 = vmax.f32 %v2073_v50, 0.0  ;;  %v1952_v10 = vadd.f32 %v3374_v38, %v4694_v28 }
 0x239   : > { %v2187_v56 = vpack.c.bf16 %v2163_v7, %v2162_v23 }
 0x23a   : > { %v2186_v30 = vpack.c.bf16 %v2161_v63, %v2160_v43  ;;  %v3375_v33 = vpop.f32.mrb[96].mxu0  ;;  %v3505_v35 = vpop.f32.mrb[96].mxu1 }
 0x23b   : > { %v2094_v53 = vadd.f32 %v3505_v35, %v1933_v52  ;;  %v3376_v24 = vpop.f32.mrb[97].mxu0  ;;  %v2085_v42 = vpop.f32.mrb[97].mxu1 }
 0x23c   : > { %v3377_v29 = vadd.f32 %v3376_v24, %v3375_v33  ;;  %v2086_v31 = vadd.f32 %v2085_v42, %v4760_v18  ;;  %v3378_v27 = vpop.f32.mrb[98].mxu0  ;;  %v3506_v11 = vpop.f32.mrb[98].mxu1  ;;  %3547 = vmatprep.mubr.bf16.mxu1 %v2186_v30 }
 0x23d   : > { %v2097_v19 = vadd.f32 %v3506_v11, %v1936_v12  ;;  %v3379_v3 = vpop.f32.mrb[99].mxu0  ;;  %v2088_v1 = vpop.f32.mrb[99].mxu1  ;;  %3548 = vmatmul.mubr.bf16.gmra.mrb[124].mxu1 %v2187_v56  ;;  %v2166_v0 = vmax.f32 %v2094_v53, 0.0 }
 0x23e   : > { %v3380_v57 = vadd.f32 %v3379_v3, %v3378_v27  ;;  %v2089_v28 = vadd.f32 %v2088_v1, %v4763_v51  ;;  %v1957_v36 = vadd.f32 %v3377_v29, %v4703_v22  ;;  %v2164_v52 = vmax.f32 %v2086_v31, 0.0 }
 0x23f   : > { %v2167_v37 = vmax.f32 %v2097_v19, 0.0 }
 0x240   : > { %v2165_v60 = vmax.f32 %v2089_v28, 0.0  ;;  %v1960_v41 = vadd.f32 %v3380_v57, %v4708_v59 }
 0x241   : > { %v2189_v25 = vpack.c.bf16 %v2167_v37, %v2166_v0 }
 0x242   : > { %v2188_v18 = vpack.c.bf16 %v2165_v60, %v2164_v52  ;;  %v3381_v14 = vpop.f32.mrb[100].mxu0  ;;  %v3509_v6 = vpop.f32.mrb[100].mxu1 }
 0x243   : > { %v2110_v32 = vadd.f32 %v3509_v6, %v1949_v47  ;;  %v3382_v12 = vpop.f32.mrb[101].mxu0  ;;  %v2101_v20 = vpop.f32.mrb[101].mxu1 }
 0x244   : > { %v3383_v2 = vadd.f32 %v3382_v12, %v3381_v14  ;;  %v2102_v40 = vadd.f32 %v2101_v20, %v1941_v15  ;;  %v3384_v13 = vpop.f32.mrb[102].mxu0  ;;  %v3510_v61 = vpop.f32.mrb[102].mxu1  ;;  %3551 = vmatprep.mubr.bf16.mxu1 %v2188_v18  ;;  %v4799_v20 = vld [vmem:[%s4960_s4] ss:$0 sm:$0xff] }
 0x245   : > { %v2113_v51 = vadd.f32 %v3510_v61, %v1952_v10  ;;  %v3385_v22 = vpop.f32.mrb[103].mxu0  ;;  %v2104_v44 = vpop.f32.mrb[103].mxu1  ;;  %3552 = vmatmul.mubr.bf16.gmra.mrb[128].mxu1 %v2189_v25  ;;  %v2170_v45 = vmax.f32 %v2110_v32, 0.0 }
 0x246   : > { %v3386_v5 = vadd.f32 %v3385_v22, %v3384_v13  ;;  %v2105_v62 = vadd.f32 %v2104_v44, %v4777_v4  ;;  %v1965_v59 = vadd.f32 %v3383_v2, %v4717_v17  ;;  %v2168_v54 = vmax.f32 %v2102_v40, 0.0 }
 0x247   : > { %v2171_v16 = vmax.f32 %v2113_v51, 0.0 }
 0x248   : > { %v2169_v49 = vmax.f32 %v2105_v62, 0.0  ;;  %v1968_v8 = vadd.f32 %v3386_v5, %v4722_v9 }
 0x249   : > { %v2191_v55 = vpack.c.bf16 %v2171_v16, %v2170_v45 }
 0x24a   : > { %v2190_v15 = vpack.c.bf16 %v2169_v49, %v2168_v54  ;;  %v3387_v48 = vpop.f32.mrb[104].mxu0  ;;  %v3513_v39 = vpop.f32.mrb[104].mxu1 }
 0x24b   : > { %v2126_v21 = vadd.f32 %v3513_v39, %v1965_v59  ;;  %v3388_v38 = vpop.f32.mrb[105].mxu0  ;;  %v2117_v50 = vpop.f32.mrb[105].mxu1 }
 0x24c   : > { %v3389_v47 = vadd.f32 %v3388_v38, %v3387_v48  ;;  %v2118_v23 = vadd.f32 %v2117_v50, %v1957_v36  ;;  %v3390_v7 = vpop.f32.mrb[106].mxu0  ;;  %v3514_v43 = vpop.f32.mrb[106].mxu1  ;;  %3555 = vmatprep.mubr.bf16.mxu1 %v2190_v15 }
 0x24d   : > { %v2129_v4 = vadd.f32 %v3514_v43, %v1968_v8  ;;  %v3391_v17 = vpop.f32.mrb[107].mxu0  ;;  %v2120_v63 = vpop.f32.mrb[107].mxu1  ;;  %3556 = vmatmul.mubr.bf16.gmra.mrb[132].mxu1 %v2191_v55  ;;  %v2174_v30 = vmax.f32 %v2126_v21, 0.0 }
 0x24e   : > { %v3392_v10 = vadd.f32 %v3391_v17, %v3390_v7  ;;  %v2121_v56 = vadd.f32 %v2120_v63, %v1960_v41  ;;  %v1973_v9 = vadd.f32 %v3389_v47, %v4731_v46  ;;  %v2172_v35 = vmax.f32 %v2118_v23, 0.0 }
 0x24f   : > { %v2175_v33 = vmax.f32 %v2129_v4, 0.0 }
 0x250   : > { %v2173_v53 = vmax.f32 %v2121_v56, 0.0  ;;  %v1976_v24 = vadd.f32 %v3392_v10, %v4736_v58 }
 0x251   : > { %v2193_v42 = vpack.c.bf16 %v2175_v33, %v2174_v30 }
 0x252   : > { %v2192_v29 = vpack.c.bf16 %v2173_v53, %v2172_v35  ;;  %v3393_v31 = vpop.f32.mrb[108].mxu0  ;;  %v3517_v27 = vpop.f32.mrb[108].mxu1 }
 0x253   : > { %v3394_v11 = vpop.f32.mrb[109].mxu0  ;;  %v2133_v19 = vpop.f32.mrb[109].mxu1 }
 0x254   : > { %v3395_v3 = vadd.f32 %v3394_v11, %v3393_v31  ;;  %v2134_v1 = vadd.f32 %v2133_v19, %v1973_v9  ;;  %v3396_v57 = vpop.f32.mrb[110].mxu0  ;;  %v3518_v28 = vpop.f32.mrb[110].mxu1  ;;  %3559 = vmatprep.mubr.bf16.mxu1 %v2192_v29 }
 0x255   : > { %v3397_v36 = vpop.f32.mrb[111].mxu0  ;;  %v2136_v0 = vpop.f32.mrb[111].mxu1  ;;  %3560 = vmatmul.mubr.bf16.gmra.mrb[136].mxu1 %v2193_v42 }
 0x256   : > { %v1981_v46 = vadd.f32 %v3395_v3, %v4745_v26  ;;  %v3398_v37 = vadd.f32 %v3397_v36, %v3396_v57  ;;  %v2137_v52 = vadd.f32 %v2136_v0, %v1976_v24  ;;  %v2176_v58 = vmax.f32 %v2134_v1, 0.0 }
 0x258   : > { %v2142_v60 = vadd.f32 %v3517_v27, %v1981_v46  ;;  %v1984_v41 = vadd.f32 %v3398_v37, %v4750_v34  ;;  %v2177_v25 = vmax.f32 %v2137_v52, 0.0 }
 0x25a   : > { %v2145_v18 = vadd.f32 %v3518_v28, %v1984_v41  ;;  %v2194_v14 = vpack.c.bf16 %v2177_v25, %v2176_v58  ;;  %v2178_v6 = vmax.f32 %v2142_v60, 0.0 }
 0x25c   : > { %v2179_v32 = vmax.f32 %v2145_v18, 0.0  ;;  %3563 = vmatprep.mubr.bf16.mxu1 %v2194_v14 }
 0x25e   : > { %v2195_v12 = vpack.c.bf16 %v2179_v32, %v2178_v6 }
 0x260   : > { %3564 = vmatmul.mubr.bf16.gmra.mrb[140].mxu1 %v2195_v12 }
 0x2f8   : > { %v3537_v26 = vpop.f32.mrb[112].mxu1 }
 0x2f9   : > { %v2310_v2 = vadd.f32 %v3537_v26, %v4799_v20  ;;  %v2301_v40 = vpop.f32.mrb[113].mxu1 }
 0x2fa   : > { %v2302_v13 = vadd.f32 %v4799_v20, %v2301_v40  ;;  %v3538_v34 = vpop.f32.mrb[114].mxu1 }
 0x2fb   : > { %v2313_v61 = vadd.f32 %v3538_v34, %v4799_v20  ;;  %v2304_v51 = vpop.f32.mrb[115].mxu1  ;;  %v2430_v44 = vmax.f32 %v2310_v2, 0.0 }
 0x2fc   : > { %v2305_v22 = vadd.f32 %v4799_v20, %v2304_v51  ;;  %v2428_v62 = vmax.f32 %v2302_v13, 0.0 }
 0x2fd   : > { %v2431_v5 = vmax.f32 %v2313_v61, 0.0 }
 0x2fe   : > { %v2429_v59 = vmax.f32 %v2305_v22, 0.0 }
 0x2ff   : > { %v2461_v45 = vpack.c.bf16 %v2431_v5, %v2430_v44 }
 0x300   : > { %v2460_v16 = vpack.c.bf16 %v2429_v59, %v2428_v62  ;;  %v3541_v54 = vpop.f32.mrb[116].mxu1 }
 0x301   : > { %v2326_v49 = vadd.f32 %v3541_v54, %v4799_v20  ;;  %v2317_v8 = vpop.f32.mrb[117].mxu1 }
 0x302   : > { %v2318_v55 = vadd.f32 %v4799_v20, %v2317_v8  ;;  %v3542_v15 = vpop.f32.mrb[118].mxu1  ;;  %3583 = vmatprep.mubr.bf16.mxu0 %v2460_v16 }
 0x303   : > { %v2329_v48 = vadd.f32 %v3542_v15, %v4799_v20  ;;  %v2320_v39 = vpop.f32.mrb[119].mxu1  ;;  %3584 = vmatmul.mubr.bf16.vlgmr.msra.gmra.mrb[112].mxu0 %v2461_v45  ;;  %v2434_v38 = vmax.f32 %v2326_v49, 0.0 }
 0x304   : > { %v2321_v21 = vadd.f32 %v4799_v20, %v2320_v39  ;;  %v2432_v47 = vmax.f32 %v2318_v55, 0.0 }
 0x305   : > { %v2435_v50 = vmax.f32 %v2329_v48, 0.0 }
 0x306   : > { %v2433_v23 = vmax.f32 %v2321_v21, 0.0 }
 0x307   : > { %v2463_v7 = vpack.c.bf16 %v2435_v50, %v2434_v38 }
 0x308   : > { %v2462_v43 = vpack.c.bf16 %v2433_v23, %v2432_v47  ;;  %v3545_v4 = vpop.f32.mrb[120].mxu1 }
 0x309   : > { %v2342_v17 = vadd.f32 %v3545_v4, %v4799_v20  ;;  %v2333_v63 = vpop.f32.mrb[121].mxu1 }
 0x30a   : > { %v2334_v10 = vadd.f32 %v4799_v20, %v2333_v63  ;;  %v3546_v56 = vpop.f32.mrb[122].mxu1  ;;  %3587 = vmatprep.mubr.bf16.mxu0 %v2462_v43 }
 0x30b   : > { %v2345_v9 = vadd.f32 %v3546_v56, %v4799_v20  ;;  %v2336_v30 = vpop.f32.mrb[123].mxu1  ;;  %3588 = vmatmul.mubr.bf16.gmra.mrb[116].mxu0 %v2463_v7  ;;  %v2438_v35 = vmax.f32 %v2342_v17, 0.0 }
 0x30c   : > { %v2337_v33 = vadd.f32 %v4799_v20, %v2336_v30  ;;  %v2436_v24 = vmax.f32 %v2334_v10, 0.0 }
 0x30d   : > { %v2439_v53 = vmax.f32 %v2345_v9, 0.0 }
 0x30e   : > { %v2437_v42 = vmax.f32 %v2337_v33, 0.0 }
 0x30f   : > { %v2465_v29 = vpack.c.bf16 %v2439_v53, %v2438_v35 }
 0x310   : > { %v2464_v31 = vpack.c.bf16 %v2437_v42, %v2436_v24  ;;  %v3549_v27 = vpop.f32.mrb[124].mxu1 }
 0x311   : > { %v2358_v11 = vadd.f32 %v3549_v27, %v4799_v20  ;;  %v2349_v19 = vpop.f32.mrb[125].mxu1 }
 0x312   : > { %v2350_v3 = vadd.f32 %v4799_v20, %v2349_v19  ;;  %v3550_v1 = vpop.f32.mrb[126].mxu1  ;;  %3591 = vmatprep.mubr.bf16.mxu0 %v2464_v31 }
 0x313   : > { %v2361_v57 = vadd.f32 %v3550_v1, %v4799_v20  ;;  %v2352_v28 = vpop.f32.mrb[127].mxu1  ;;  %3592 = vmatmul.mubr.bf16.gmra.mrb[120].mxu0 %v2465_v29  ;;  %v2442_v0 = vmax.f32 %v2358_v11, 0.0 }
 0x314   : > { %v2353_v36 = vadd.f32 %v4799_v20, %v2352_v28  ;;  %v2440_v37 = vmax.f32 %v2350_v3, 0.0 }
 0x315   : > { %v2443_v46 = vmax.f32 %v2361_v57, 0.0 }
 0x316   : > { %v2441_v52 = vmax.f32 %v2353_v36, 0.0  ;;  %v4837_v36 = vld [vmem:[%s4962_s6] ss:$0 sm:$0xff] }
 0x317   : > { %v2467_v60 = vpack.c.bf16 %v2443_v46, %v2442_v0 }
 0x318   : > { %v2466_v58 = vpack.c.bf16 %v2441_v52, %v2440_v37  ;;  %v3553_v41 = vpop.f32.mrb[128].mxu1 }
 0x319   : > { %v2374_v25 = vadd.f32 %v3553_v41, %v4799_v20  ;;  %v2365_v18 = vpop.f32.mrb[129].mxu1 }
 0x31a   : > { %v2366_v14 = vadd.f32 %v4799_v20, %v2365_v18  ;;  %v3554_v6 = vpop.f32.mrb[130].mxu1  ;;  %3595 = vmatprep.mubr.bf16.mxu0 %v2466_v58 }
 0x31b   : > { %v2377_v32 = vadd.f32 %v3554_v6, %v4799_v20  ;;  %v2368_v12 = vpop.f32.mrb[131].mxu1  ;;  %3596 = vmatmul.mubr.bf16.gmra.mrb[124].mxu0 %v2467_v60  ;;  %v2446_v2 = vmax.f32 %v2374_v25, 0.0 }
 0x31c   : > { %v2369_v26 = vadd.f32 %v4799_v20, %v2368_v12  ;;  %v2444_v13 = vmax.f32 %v2366_v14, 0.0 }
 0x31d   : > { %v2447_v40 = vmax.f32 %v2377_v32, 0.0 }
 0x31e   : > { %v2445_v34 = vmax.f32 %v2369_v26, 0.0 }
 0x31f   : > { %v2469_v61 = vpack.c.bf16 %v2447_v40, %v2446_v2 }
 0x320   : > { %v2468_v51 = vpack.c.bf16 %v2445_v34, %v2444_v13  ;;  %v3557_v22 = vpop.f32.mrb[132].mxu1 }
 0x321   : > { %v2390_v44 = vadd.f32 %v3557_v22, %v4799_v20  ;;  %v2381_v5 = vpop.f32.mrb[133].mxu1 }
 0x322   : > { %v2382_v62 = vadd.f32 %v4799_v20, %v2381_v5  ;;  %v3558_v59 = vpop.f32.mrb[134].mxu1  ;;  %3599 = vmatprep.mubr.bf16.mxu0 %v2468_v51 }
 0x323   : > { %v2393_v45 = vadd.f32 %v3558_v59, %v4799_v20  ;;  %v2384_v16 = vpop.f32.mrb[135].mxu1  ;;  %3600 = vmatmul.mubr.bf16.gmra.mrb[128].mxu0 %v2469_v61  ;;  %v2450_v49 = vmax.f32 %v2390_v44, 0.0 }
 0x324   : > { %v2385_v54 = vadd.f32 %v4799_v20, %v2384_v16  ;;  %v2448_v55 = vmax.f32 %v2382_v62, 0.0 }
 0x325   : > { %v2451_v8 = vmax.f32 %v2393_v45, 0.0 }
 0x326   : > { %v2449_v15 = vmax.f32 %v2385_v54, 0.0 }
 0x327   : > { %v2471_v48 = vpack.c.bf16 %v2451_v8, %v2450_v49 }
 0x328   : > { %v2470_v39 = vpack.c.bf16 %v2449_v15, %v2448_v55  ;;  %v3561_v21 = vpop.f32.mrb[136].mxu1 }
 0x329   : > { %v2406_v38 = vadd.f32 %v3561_v21, %v4799_v20  ;;  %v2397_v50 = vpop.f32.mrb[137].mxu1 }
 0x32a   : > { %v2398_v47 = vadd.f32 %v4799_v20, %v2397_v50  ;;  %v3562_v23 = vpop.f32.mrb[138].mxu1  ;;  %3603 = vmatprep.mubr.bf16.mxu0 %v2470_v39 }
 0x32b   : > { %v2409_v7 = vadd.f32 %v3562_v23, %v4799_v20  ;;  %v2400_v43 = vpop.f32.mrb[139].mxu1  ;;  %3604 = vmatmul.mubr.bf16.gmra.mrb[132].mxu0 %v2471_v48  ;;  %v2454_v17 = vmax.f32 %v2406_v38, 0.0 }
 0x32c   : > { %v2401_v4 = vadd.f32 %v4799_v20, %v2400_v43  ;;  %v2452_v10 = vmax.f32 %v2398_v47, 0.0 }
 0x32d   : > { %v2455_v63 = vmax.f32 %v2409_v7, 0.0 }
 0x32e   : > { %v2453_v56 = vmax.f32 %v2401_v4, 0.0 }
 0x32f   : > { %v2473_v9 = vpack.c.bf16 %v2455_v63, %v2454_v17 }
 0x330   : > { %v2472_v30 = vpack.c.bf16 %v2453_v56, %v2452_v10 }
 0x332   : > { %3607 = vmatprep.mubr.bf16.mxu0 %v2472_v30 }
 0x333   : > { %v3565_v33 = vpop.f32.mrb[140].mxu1  ;;  %3608 = vmatmul.mubr.bf16.gmra.mrb[136].mxu0 %v2473_v9 }
 0x334   : > { %v2422_v35 = vadd.f32 %v3565_v33, %v4799_v20  ;;  %v2413_v53 = vpop.f32.mrb[141].mxu1 }
 0x335   : > { %v2414_v24 = vadd.f32 %v4799_v20, %v2413_v53  ;;  %v3566_v42 = vpop.f32.mrb[142].mxu1 }
 0x336   : > { %v2425_v29 = vadd.f32 %v3566_v42, %v4799_v20  ;;  %v2416_v31 = vpop.f32.mrb[143].mxu1  ;;  %v2458_v11 = vmax.f32 %v2422_v35, 0.0 }
 0x337   : > { %v2417_v27 = vadd.f32 %v4799_v20, %v2416_v31  ;;  %v2456_v3 = vmax.f32 %v2414_v24, 0.0 }
 0x338   : > { %v2459_v19 = vmax.f32 %v2425_v29, 0.0 }
 0x339   : > { %v2457_v1 = vmax.f32 %v2417_v27, 0.0 }
 0x33a   : > { %v2475_v57 = vpack.c.bf16 %v2459_v19, %v2458_v11 }
 0x33b   : > { %v2474_v28 = vpack.c.bf16 %v2457_v1, %v2456_v3 }
 0x33d   : > { %3611 = vmatprep.mubr.bf16.mxu0 %v2474_v28 }
 0x33e   : > { %3612 = vmatmul.mubr.bf16.gmra.mrb[140].mxu0 %v2475_v57 }
 0x3d6   : > { %v3585_v0 = vpop.f32.mrb[112].mxu0 }
 0x3d7   : > { %v2590_v46 = vadd.f32 %v3585_v0, %v4837_v36  ;;  %v2581_v37 = vpop.f32.mrb[113].mxu0 }
 0x3d8   : > { %v2582_v20 = vadd.f32 %v4837_v36, %v2581_v37  ;;  %v3586_v52 = vpop.f32.mrb[114].mxu0 }
 0x3d9   : > { %2710 = vst [vmem:[%s4841_s10 + $0x10] sm:$0xff] %v2590_v46  ;;  %v2593_v60 = vadd.f32 %v3586_v52, %v4837_v36  ;;  %v2584_v58 = vpop.f32.mrb[115].mxu0 }
 0x3da   : > { %2708 = vst [vmem:[%s4841_s10] sm:$0xff] %v2582_v20  ;;  %v2585_v41 = vadd.f32 %v4837_v36, %v2584_v58 }
 0x3db   : > { %2711 = vst [vmem:[%s4841_s10 + $0x18] sm:$0xff] %v2593_v60 }
 0x3dc   : > { %2709 = vst [vmem:[%s4841_s10 + $0x8] sm:$0xff] %v2585_v41 }
 0x3de   : > { %v3589_v25 = vpop.f32.mrb[116].mxu0 }
 0x3df   : > { %v2606_v18 = vadd.f32 %v3589_v25, %v4837_v36  ;;  %v2597_v14 = vpop.f32.mrb[117].mxu0 }
 0x3e0   : > { %v2598_v6 = vadd.f32 %v4837_v36, %v2597_v14  ;;  %v3590_v32 = vpop.f32.mrb[118].mxu0 }
 0x3e1   : > { %2714 = vst [vmem:[%s4841_s10 + $0x30] sm:$0xff] %v2606_v18  ;;  %v2609_v12 = vadd.f32 %v3590_v32, %v4837_v36  ;;  %v2600_v26 = vpop.f32.mrb[119].mxu0 }
 0x3e2   : > { %2712 = vst [vmem:[%s4841_s10 + $0x20] sm:$0xff] %v2598_v6  ;;  %v2601_v2 = vadd.f32 %v4837_v36, %v2600_v26 }
 0x3e3   : > { %2715 = vst [vmem:[%s4841_s10 + $0x38] sm:$0xff] %v2609_v12 }
 0x3e4   : > { %2713 = vst [vmem:[%s4841_s10 + $0x28] sm:$0xff] %v2601_v2 }
 0x3e6   : > { %v3593_v40 = vpop.f32.mrb[120].mxu0 }
 0x3e7   : > { %v2622_v13 = vadd.f32 %v3593_v40, %v4837_v36  ;;  %v2613_v34 = vpop.f32.mrb[121].mxu0 }
 0x3e8   : > { %v2614_v61 = vadd.f32 %v4837_v36, %v2613_v34  ;;  %v3594_v51 = vpop.f32.mrb[122].mxu0 }
 0x3e9   : > { %2718 = vst [vmem:[%s4841_s10 + $0x50] sm:$0xff] %v2622_v13  ;;  %v2625_v22 = vadd.f32 %v3594_v51, %v4837_v36  ;;  %v2616_v44 = vpop.f32.mrb[123].mxu0 }
 0x3ea   : > { %2716 = vst [vmem:[%s4841_s10 + $0x40] sm:$0xff] %v2614_v61  ;;  %v2617_v5 = vadd.f32 %v4837_v36, %v2616_v44 }
 0x3eb   : > { %2719 = vst [vmem:[%s4841_s10 + $0x58] sm:$0xff] %v2625_v22 }
 0x3ec   : > { %2717 = vst [vmem:[%s4841_s10 + $0x48] sm:$0xff] %v2617_v5 }
 0x3ee   : > { %v3597_v62 = vpop.f32.mrb[124].mxu0 }
 0x3ef   : > { %v2638_v59 = vadd.f32 %v3597_v62, %v4837_v36  ;;  %v2629_v45 = vpop.f32.mrb[125].mxu0 }
 0x3f0   : > { %v2630_v16 = vadd.f32 %v4837_v36, %v2629_v45  ;;  %v3598_v54 = vpop.f32.mrb[126].mxu0 }
 0x3f1   : > { %2722 = vst [vmem:[%s4841_s10 + $0x70] sm:$0xff] %v2638_v59  ;;  %v2641_v49 = vadd.f32 %v3598_v54, %v4837_v36  ;;  %v2632_v8 = vpop.f32.mrb[127].mxu0 }
 0x3f2   : > { %2720 = vst [vmem:[%s4841_s10 + $0x60] sm:$0xff] %v2630_v16  ;;  %v2633_v55 = vadd.f32 %v4837_v36, %v2632_v8 }
 0x3f3   : > { %2723 = vst [vmem:[%s4841_s10 + $0x78] sm:$0xff] %v2641_v49 }
 0x3f4   : > { %2721 = vst [vmem:[%s4841_s10 + $0x68] sm:$0xff] %v2633_v55 }
 0x3f6   : > { %v3601_v15 = vpop.f32.mrb[128].mxu0 }
 0x3f7   : > { %v2654_v48 = vadd.f32 %v3601_v15, %v4837_v36  ;;  %v2645_v39 = vpop.f32.mrb[129].mxu0 }
 0x3f8   : > { %v2646_v21 = vadd.f32 %v4837_v36, %v2645_v39  ;;  %v3602_v38 = vpop.f32.mrb[130].mxu0 }
 0x3f9   : > { %2726 = vst [vmem:[%s4841_s10 + $0x90] sm:$0xff] %v2654_v48  ;;  %v2657_v50 = vadd.f32 %v3602_v38, %v4837_v36  ;;  %v2648_v47 = vpop.f32.mrb[131].mxu0 }
 0x3fa   : > { %2724 = vst [vmem:[%s4841_s10 + $0x80] sm:$0xff] %v2646_v21  ;;  %v2649_v23 = vadd.f32 %v4837_v36, %v2648_v47 }
 0x3fb   : > { %2727 = vst [vmem:[%s4841_s10 + $0x98] sm:$0xff] %v2657_v50 }
 0x3fc   : > { %2725 = vst [vmem:[%s4841_s10 + $0x88] sm:$0xff] %v2649_v23 }
 0x3fe   : > { %v3605_v7 = vpop.f32.mrb[132].mxu0 }
 0x3ff   : > { %v2670_v43 = vadd.f32 %v3605_v7, %v4837_v36  ;;  %v2661_v4 = vpop.f32.mrb[133].mxu0 }
 0x400   : > { %v2662_v17 = vadd.f32 %v4837_v36, %v2661_v4  ;;  %v3606_v63 = vpop.f32.mrb[134].mxu0 }
 0x401   : > { %2730 = vst [vmem:[%s4841_s10 + $0xb0] sm:$0xff] %v2670_v43  ;;  %v2673_v10 = vadd.f32 %v3606_v63, %v4837_v36  ;;  %v2664_v56 = vpop.f32.mrb[135].mxu0 }
 0x402   : > { %2728 = vst [vmem:[%s4841_s10 + $0xa0] sm:$0xff] %v2662_v17  ;;  %v2665_v9 = vadd.f32 %v4837_v36, %v2664_v56 }
 0x403   : > { %2731 = vst [vmem:[%s4841_s10 + $0xb8] sm:$0xff] %v2673_v10 }
 0x404   : > { %2729 = vst [vmem:[%s4841_s10 + $0xa8] sm:$0xff] %v2665_v9 }
 0x406   : > { %v3609_v30 = vpop.f32.mrb[136].mxu0 }
 0x407   : > { %v2686_v33 = vadd.f32 %v3609_v30, %v4837_v36  ;;  %v2677_v35 = vpop.f32.mrb[137].mxu0 }
 0x408   : > { %v2678_v53 = vadd.f32 %v4837_v36, %v2677_v35  ;;  %v3610_v24 = vpop.f32.mrb[138].mxu0 }
 0x409   : > { %2734 = vst [vmem:[%s4841_s10 + $0xd0] sm:$0xff] %v2686_v33  ;;  %v2689_v42 = vadd.f32 %v3610_v24, %v4837_v36  ;;  %v2680_v29 = vpop.f32.mrb[139].mxu0 }
 0x40a   : > { %2732 = vst [vmem:[%s4841_s10 + $0xc0] sm:$0xff] %v2678_v53  ;;  %v2681_v31 = vadd.f32 %v4837_v36, %v2680_v29 }
 0x40b   : > { %2735 = vst [vmem:[%s4841_s10 + $0xd8] sm:$0xff] %v2689_v42 }
 0x40c   : > { %2733 = vst [vmem:[%s4841_s10 + $0xc8] sm:$0xff] %v2681_v31 }
 0x411   : > { %v3613_v27 = vpop.f32.mrb[140].mxu0 }
 0x412   : > { %v2702_v11 = vadd.f32 %v3613_v27, %v4837_v36  ;;  %v2693_v19 = vpop.f32.mrb[141].mxu0 }
 0x413   : > { %v2694_v3 = vadd.f32 %v4837_v36, %v2693_v19  ;;  %v3614_v1 = vpop.f32.mrb[142].mxu0 }
 0x414   : > { %2738 = vst [vmem:[%s4841_s10 + $0xf0] sm:$0xff] %v2702_v11  ;;  %v2705_v57 = vadd.f32 %v3614_v1, %v4837_v36  ;;  %v2696_v28 = vpop.f32.mrb[143].mxu0 }
 0x415   : > { %2736 = vst [vmem:[%s4841_s10 + $0xe0] sm:$0xff] %v2694_v3  ;;  %v2697_v0 = vadd.f32 %v4837_v36, %v2696_v28 }
 0x416   : > { %2739 = vst [vmem:[%s4841_s10 + $0xf8] sm:$0xff] %v2705_v57 }
 0x417   : > { %2737 = vst [vmem:[%s4841_s10 + $0xe8] sm:$0xff] %v2697_v0 }
 0x418   : > { %4076 = shalt.err (!%p4073_p4)
}
 0x419   : > { %s4077_s29 = scalar_lea.hbm %s4906_s15, 4096  ;;  %s4081_s16 = scalar_lea.hbm %s4963_s7, 8192 }
 0x41a   : > { %p4078_p9 = scmp.ne.s32.totalorder %s4906_s15, %s4077_s29  ;;  %p4082_p8 = scmp.lt.u32.totalorder %s4906_s15, %s4963_s7 }
 0x41b   : > { %p4083_p13 = scmp.lt.u32.totalorder %s4081_s16, %s4077_s29  ;;  %p4085_p10 = scmp.lt.u32.totalorder %s4077_s29, %s4906_s15 }
 0x41c   : > { %p4079_p0 = pnand %p4078_p9, %p4344_p5 }
 0x41d   : > { %p4084_p6 = por %p4083_p13, %p4082_p8 }
 0x41e   : > { %p4080_p11 = pneg %p4079_p0 }
 0x41f   : > { %p4086_p3 = por %p4085_p10, %p4084_p6 }
 0x421   : > { %p4087_p7 = pnand %p4086_p3, %p4080_p11 }
 0x423   : > { %4090 = shalt.err (!%p4087_p7)
}
 0x424   : > { %s4148_s17 = smov 128   ;;  %s4149_s13 = smov 8  }
 0x425   : > { %3648 = dma.vmem_to_hbm [thread:$0]  (%p4344_p5), %s4908_s8, 4096, %s4906_s15, %s2741_s28, %s4148_s17, %s4148_s17, %s4149_s13  }
 0x426 PF: > { %s4983_s20 = sld [smem:[#allocation15_spill]]  ;;  %s2769_s30 = sand.u32 1, %s4125_s24  }
 0x427   : > { %p4985_p1 = scmp.ge.s32.totalorder %s4137_s27, 2  ;;  %s2770_s9 = scalar_lea.sflag [#allocation4], %s2769_s30 }
 0x42c   : > { %p4984_p12 = scmp.ne.s32.totalorder %s4983_s20, 0 }
 0x42e   : > { %p3665_p2 = pnand %p4985_p1, %p4984_p12 }
 0x430   : > { %4120 = dma.done.wait (!%p3665_p2), %s2770_s9, 4096  }
 0x431   : > { %4122 = vsyncadd (!%p3665_p2), %s2770_s9, 4294963200  ;;  %p22_p4 = scmp.ge.s32.totalorder %s4330_s22, 4   ;;  %s4986_s24 = smov %s4129_s25 }
 0x432   : > { %s4987_s25 = smov %s4133_s26  ;;  %s4988_s26 = smov %s4340_s18 }
 0x433   : > { %s4989_s27 = smov %s4330_s22  ;;  %24 = sbr.rel (!%p22_p4) target bundleno = 7 (0x7), region = 105 }
 0x43a   :  { %2775 = vsyncpa [#allocation3], 1 }
 0x43b   :  { %2777 = vsyncpa [#allocation3 + $0x1], 1 }
 0x43c   :  { %2778 = vsyncpa [#allocation6], 1 }
 0x43d   :  { %2779 = vsyncpa [#allocation9], 1 }
 0x43e   :  { %2780 = vsyncpa [#allocation4], 1 }
 0x43f   :  { %2782 = vsyncpa [#allocation4 + $0x1], 1 }

</bundles_post_ra>
